<compile_context>
chip_gen: v7x
topology: tpu7x:2x2x1
jax: 0.10.0
libtpu: 0.0.40
codegen_flags: <defaults>
</compile_context>

<pallas_src>
import functools
import math

import jax
import jax.numpy as jnp
from jax.experimental import pallas as pl
from jax.experimental.pallas import tpu as pltpu


# ----------------------------------------------------------------------------
# Kernel
# ----------------------------------------------------------------------------
def _layernorm(x, gamma, beta, eps=1e-5):
    mu = jnp.mean(x, axis=-1, keepdims=True)
    xc = x - mu
    var = jnp.mean(xc * xc, axis=-1, keepdims=True)
    return xc * jax.lax.rsqrt(var + eps) * gamma + beta


def _fused_layer_kernel(*refs, H, Dh, M, has_mem, mxu_dtype):
    it = iter(refs)
    x_ref = next(it)
    mem_ref = next(it) if has_mem else None
    wq_ref, wk_ref, wv_ref, wo_ref = next(it), next(it), next(it), next(it)
    bq_ref, bk_ref, bv_ref, bo_ref = next(it), next(it), next(it), next(it)
    g1_ref, be1_ref = next(it), next(it)
    w1_ref, b1_ref, w2_ref, b2_ref = next(it), next(it), next(it), next(it)
    g2_ref, be2_ref = next(it), next(it)
    out_ref, ent_ref = next(it), next(it)
    qh_s, kh_s, vh_s, of_s = next(it), next(it), next(it), next(it)

    T = x_ref.shape[1]
    scale = 1.0 / math.sqrt(Dh)

    x_f32 = x_ref[0].astype(jnp.float32)                           # (T, E)
    x_mx = x_f32.astype(mxu_dtype)

    # ---- E-deep QKV projections (weights already in mxu_dtype) ----
    q = (jnp.dot(x_mx, wq_ref[...], preferred_element_type=jnp.float32)
         + bq_ref[...]) * scale                                     # (T, E)
    kx = jnp.dot(x_mx, wk_ref[...], preferred_element_type=jnp.float32) + bk_ref[...]
    vx = jnp.dot(x_mx, wv_ref[...], preferred_element_type=jnp.float32) + bv_ref[...]

    if has_mem:
        mem_mx = mem_ref[...].astype(mxu_dtype)                     # (M, E)
        km = jnp.dot(mem_mx, wk_ref[...], preferred_element_type=jnp.float32) + bk_ref[...]
        vm = jnp.dot(mem_mx, wv_ref[...], preferred_element_type=jnp.float32) + bv_ref[...]

    # ---- repack head-major ONCE into mxu_dtype scratch; the [mem ; x] K/V
    #      "concat" is done by writing into adjacent row ranges (no concatenate).
    for h in range(H):
        sl = slice(h * Dh, (h + 1) * Dh)
        qh_s[h] = q[:, sl].astype(mxu_dtype)
        if has_mem:
            kh_s[h, 0:M] = km[:, sl].astype(mxu_dtype)
            vh_s[h, 0:M] = vm[:, sl].astype(mxu_dtype)
            kh_s[h, M:M + T] = kx[:, sl].astype(mxu_dtype)
            vh_s[h, M:M + T] = vx[:, sl].astype(mxu_dtype)
        else:
            kh_s[h] = kx[:, sl].astype(mxu_dtype)
            vh_s[h] = vx[:, sl].astype(mxu_dtype)

    qh = qh_s[...]                                                  # (H, T, Dh)
    kh = kh_s[...]                                                  # (H, S, Dh)
    vh = vh_s[...]                                                  # (H, S, Dh)

    # ---- batched attention over all heads (leading-batch-dim contraction) ----
    sc = jnp.einsum('htd,hsd->hts', qh, kh,
                    preferred_element_type=jnp.float32)             # (H, T, S) f32
    m = jnp.max(sc, axis=-1, keepdims=True)                         # (H, T, 1)
    p = jnp.exp(sc - m)                                             # un-normalized
    z = jnp.sum(p, axis=-1, keepdims=True)                          # (H, T, 1)
    psc = jnp.sum(p * sc, axis=-1, keepdims=True)                   # (H, T, 1)
    inv_z = pl.reciprocal(z, approx=True)                           # EUP slot

    # analytic row entropy: -sum(w log w) = m + log z - sum(p*sc)/z
    ent_h = m[..., 0] + jnp.log(z[..., 0]) - psc[..., 0] * inv_z[..., 0]   # (H, T)
    ent_ref[0] = jnp.max(ent_h, axis=0, keepdims=True)              # (1, T) max over heads

    # P @ V on the UN-normalized p; normalize the small (H, T, Dh) result.
    o = jnp.einsum('hts,hsd->htd', p.astype(mxu_dtype), vh,
                   preferred_element_type=jnp.float32) * inv_z      # (H, T, Dh)

    # ---- flatten heads back to (T, E) -> ONE E-deep output projection ----
    for h in range(H):
        of_s[:, h * Dh:(h + 1) * Dh] = o[h].astype(mxu_dtype)
    attn = jnp.dot(of_s[...], wo_ref[...],
                   preferred_element_type=jnp.float32) + bo_ref[...]        # (T, E)

    # ---- fused post-attention block: norm1 -> Linear/ReLU/Linear -> norm2 ----
    x2 = _layernorm(x_f32 + attn, g1_ref[...], be1_ref[...])
    h1 = jnp.maximum(
        jnp.dot(x2.astype(mxu_dtype), w1_ref[...],
                preferred_element_type=jnp.float32) + b1_ref[...], 0.0)
    y = x2 + jnp.dot(h1.astype(mxu_dtype), w2_ref[...],
                     preferred_element_type=jnp.float32) + b2_ref[...]
    out_ref[0] = _layernorm(y, g2_ref[...], be2_ref[...]).astype(out_ref.dtype)


# ----------------------------------------------------------------------------
# Wrapper
# ----------------------------------------------------------------------------
def fused_layer_pallas(x, mem, params, *, num_heads, mxu_dtype=jnp.bfloat16):
    B, T, E = x.shape
    H = num_heads
    assert E % H == 0
    Dh = E // H
    has_mem = mem is not None
    M = int(mem.shape[0]) if has_mem else 0
    S = M + T
    HID = params["w1"].shape[1]

    # Host-side cast of all matmul weights to the MXU dtype (halves weight
    # DMA / VMEM, removes per-grid-step casts).  Biases / LN params stay f32.
    wq = params["wq"].astype(mxu_dtype)
    wk = params["wk"].astype(mxu_dtype)
    wv = params["wv"].astype(mxu_dtype)
    wo = params["wo"].astype(mxu_dtype)
    w1 = params["w1"].astype(mxu_dtype)
    w2 = params["w2"].astype(mxu_dtype)

    def full(shape):
        zeros = (0,) * len(shape)
        return pl.BlockSpec(shape, lambda b: zeros)

    in_specs = [pl.BlockSpec((1, T, E), lambda b: (b, 0, 0))]
    inputs = [x]
    if has_mem:
        in_specs.append(full((M, E)))     # memory bank passed ONCE, un-broadcast
        inputs.append(mem)
    in_specs += [
        full((E, E)), full((E, E)), full((E, E)), full((E, E)),       # wq wk wv wo
        full((1, E)), full((1, E)), full((1, E)), full((1, E)),       # bq bk bv bo
        full((1, E)), full((1, E)),                                   # ln1 g/b
        full((E, HID)), full((1, HID)), full((HID, E)), full((1, E)), # ffn
        full((1, E)), full((1, E)),                                   # ln2 g/b
    ]
    inputs += [wq, wk, wv, wo,
               params["bq"], params["bk"], params["bv"], params["bo"],
               params["ln1_g"], params["ln1_b"],
               w1, params["b1"], w2, params["b2"],
               params["ln2_g"], params["ln2_b"]]

    out_specs = [pl.BlockSpec((1, T, E), lambda b: (b, 0, 0)),
                 pl.BlockSpec((1, 1, T), lambda b: (b, 0, 0))]
    out_shape = (jax.ShapeDtypeStruct((B, T, E), jnp.float32),
                 jax.ShapeDtypeStruct((B, 1, T), jnp.float32))

    scratch_shapes = [
        pltpu.VMEM((H, T, Dh), mxu_dtype),   # Q, head-major
        pltpu.VMEM((H, S, Dh), mxu_dtype),   # K, rows = [mem ; x]
        pltpu.VMEM((H, S, Dh), mxu_dtype),   # V, rows = [mem ; x]
        pltpu.VMEM((T, E), mxu_dtype),       # attention output, heads flattened
    ]

    kernel = functools.partial(_fused_layer_kernel, H=H, Dh=Dh, M=M,
                               has_mem=has_mem, mxu_dtype=mxu_dtype)
    return pl.pallas_call(
        kernel,
        out_shape=out_shape,
        grid_spec=pltpu.PrefetchScalarGridSpec(
            num_scalar_prefetch=0, grid=(B,),
            in_specs=in_specs, out_specs=out_specs,
            scratch_shapes=scratch_shapes),
        compiler_params=pltpu.CompilerParams(
            dimension_semantics=("parallel",),
            vmem_limit_bytes=64 * 1024 * 1024),
    )(*inputs)


# ----------------------------------------------------------------------------
# Full module forward (dynamic-shape memory bookkeeping stays host-side, like torch)
# ----------------------------------------------------------------------------
def improved_memory_transformer_layer(params, x, mem_x, mem_ent, *, num_heads,
                                      mem_size, mxu_dtype=jnp.bfloat16):
    out, ent = fused_layer_pallas(x, mem_x, params, num_heads=num_heads,
                                  mxu_dtype=mxu_dtype)
    ent_tok = ent[0, 0]                                  # batch element 0, (T,)
    x_det = jax.lax.stop_gradient(x)[0]                  # (T, E)

    if mem_x is None:
        mem_x_new, mem_ent_new = x_det, ent_tok
    else:
        mem_x_new = jnp.concatenate([mem_x, x_det], axis=0)
        mem_ent_new = jnp.concatenate([mem_ent, ent_tok], axis=0)

    eps = 1e-10
    if mem_x_new.shape[0] > mem_size:                    # static-shape check, no sync
        total_ent = jnp.sum(mem_ent_new) + eps
        top_vals, idx = jax.lax.top_k(mem_ent_new, mem_size)
        ratio = jnp.sum(top_vals) / total_ent            # traced device scalar
        mem_x_new = mem_x_new[idx]
        mem_ent_new = top_vals
    else:
        ratio = jnp.float32(1.0)

    return out, mem_x_new, mem_ent_new, ratio


# ----------------------------------------------------------------------------
# Pure-JAX reference (mirrors the PyTorch module math) for correctness checking
# ----------------------------------------------------------------------------
def reference_layer(params, x, mem, *, num_heads):
    B, T, E = x.shape
    H = num_heads
    Dh = E // H
    if mem is None:
        kv = x
    else:
        kv = jnp.concatenate(
            [jnp.broadcast_to(mem[None], (B,) + mem.shape), x], axis=1)
    S = kv.shape[1]
    q = (x @ params["wq"] + params["bq"]) * (1.0 / math.sqrt(Dh))
    k = kv @ params["wk"] + params["bk"]
    v = kv @ params["wv"] + params["bv"]
    qh = q.reshape(B, T, H, Dh).transpose(0, 2, 1, 3)
    kh = k.reshape(B, S, H, Dh).transpose(0, 2, 1, 3)
    vh = v.reshape(B, S, H, Dh).transpose(0, 2, 1, 3)
    sc = jnp.einsum('bhtd,bhsd->bhts', qh, kh)
    w = jax.nn.softmax(sc, axis=-1)
    o = jnp.einsum('bhts,bhsd->bhtd', w, vh)
    attn = o.transpose(0, 2, 1, 3).reshape(B, T, E) @ params["wo"] + params["bo"]
    x2 = _layernorm(x + attn, params["ln1_g"], params["ln1_b"])
    h1 = jnp.maximum(x2 @ params["w1"] + params["b1"], 0.0)
    y = x2 + h1 @ params["w2"] + params["b2"]
    out = _layernorm(y, params["ln2_g"], params["ln2_b"])
    ent = -(w * jnp.log(w + 1e-10)).sum(-1)              # (B, H, T)
    return out, jnp.max(ent, axis=1)                     # (B, T) max over heads


# ----------------------------------------------------------------------------
# Deterministic parameter init (mirrors nn.MultiheadAttention / LayerNorm / FF shapes)
# ----------------------------------------------------------------------------
def init_params(key, embed_dim):
    E = embed_dim
    HID = 4 * E
    ks = jax.random.split(key, 8)
    s = 0.05
    return {
        # attention (weights stored transposed: y = x @ W + b)
        "wq": jax.random.normal(ks[0], (E, E), jnp.float32) * s,
        "wk": jax.random.normal(ks[1], (E, E), jnp.float32) * s,
        "wv": jax.random.normal(ks[2], (E, E), jnp.float32) * s,
        "wo": jax.random.normal(ks[3], (E, E), jnp.float32) * s,
        "bq": jax.random.normal(ks[4], (1, E), jnp.float32) * s,
        "bk": jnp.zeros((1, E), jnp.float32),
        "bv": jnp.zeros((1, E), jnp.float32),
        "bo": jnp.zeros((1, E), jnp.float32),
        # layernorms
        "ln1_g": jnp.ones((1, E), jnp.float32),
        "ln1_b": jnp.zeros((1, E), jnp.float32),
        "ln2_g": jnp.ones((1, E), jnp.float32),
        "ln2_b": jnp.zeros((1, E), jnp.float32),
        # feed-forward
        "w1": jax.random.normal(ks[5], (E, HID), jnp.float32) * s,
        "b1": jnp.zeros((1, HID), jnp.float32),
        "w2": jax.random.normal(ks[6], (HID, E), jnp.float32) * s,
        "b2": jnp.zeros((1, E), jnp.float32),
    }


if __name__ == "__main__":
    B, T, E, H, MEM = 2, 8, 32, 4, 16
    key = jax.random.PRNGKey(0)
    pkey, k1, k2, k3 = jax.random.split(key, 4)
    params = init_params(pkey, E)

    mem_x = mem_ent = None
    ratios = []
    # step 1: no memory (k=v=x); step 2: 8-token memory; step 3: triggers eviction
    for xkey in (k1, k2, k3):
        x = jax.random.normal(xkey, (B, T, E), jnp.float32)

        # kernel vs. pure-JAX reference on the current (x, memory) state
        out_k, ent_k = fused_layer_pallas(x, mem_x, params, num_heads=H)
        out_r, ent_r = reference_layer(params, x, mem_x, num_heads=H)
        jax.block_until_ready((out_k, ent_k, out_r, ent_r))
        err_out = float(jnp.max(jnp.abs(out_k - out_r)))
        err_ent = float(jnp.max(jnp.abs(ent_k[:, 0, :] - ent_r)))
        assert err_out < 1e-1, f"output mismatch vs reference: {err_out}"
        assert err_ent < 5e-2, f"entropy mismatch vs reference: {err_ent}"
        assert bool(jnp.all(jnp.isfinite(out_k)))

        out, mem_x, mem_ent, ratio = improved_memory_transformer_layer(
            params, x, mem_x, mem_ent, num_heads=H, mem_size=MEM)
        ratios.append(ratio)

    jax.block_until_ready((out, mem_x, mem_ent, ratios))

    assert out.shape == (B, T, E)
    assert mem_x.shape == (MEM, E) and mem_ent.shape == (MEM,)
    assert bool(jnp.all(jnp.isfinite(mem_ent)))
    assert float(ratios[0]) == 1.0 and float(ratios[1]) == 1.0
    r_final = float(ratios[-1])
    assert 0.0 < r_final <= 1.0, r_final

    print("KERNEL_OK")
</pallas_src>

<mosaic_0001>
module attributes {stable_mosaic.version = 11 : i64} {
  func.func @_fused_layer_kernel(%arg0: i32, %arg1: memref<1x8x32xf32, #tpu.memory_space<vmem>>, %arg2: memref<32x32xbf16, #tpu.memory_space<vmem>>, %arg3: memref<32x32xbf16, #tpu.memory_space<vmem>>, %arg4: memref<32x32xbf16, #tpu.memory_space<vmem>>, %arg5: memref<32x32xbf16, #tpu.memory_space<vmem>>, %arg6: memref<1x32xf32, #tpu.memory_space<vmem>>, %arg7: memref<1x32xf32, #tpu.memory_space<vmem>>, %arg8: memref<1x32xf32, #tpu.memory_space<vmem>>, %arg9: memref<1x32xf32, #tpu.memory_space<vmem>>, %arg10: memref<1x32xf32, #tpu.memory_space<vmem>>, %arg11: memref<1x32xf32, #tpu.memory_space<vmem>>, %arg12: memref<32x128xbf16, #tpu.memory_space<vmem>>, %arg13: memref<1x128xf32, #tpu.memory_space<vmem>>, %arg14: memref<128x32xbf16, #tpu.memory_space<vmem>>, %arg15: memref<1x32xf32, #tpu.memory_space<vmem>>, %arg16: memref<1x32xf32, #tpu.memory_space<vmem>>, %arg17: memref<1x32xf32, #tpu.memory_space<vmem>>, %arg18: memref<1x8x32xf32, #tpu.memory_space<vmem>>, %arg19: memref<1x1x8xf32, #tpu.memory_space<vmem>>, %arg20: memref<4x8x8xbf16, #tpu.memory_space<vmem>>, %arg21: memref<4x8x8xbf16, #tpu.memory_space<vmem>>, %arg22: memref<4x8x8xbf16, #tpu.memory_space<vmem>>, %arg23: memref<8x32xbf16, #tpu.memory_space<vmem>>) attributes {dimension_semantics = [#tpu.dimension_semantics<parallel>], iteration_bounds = array<i64: 2>, scalar_prefetch = 0 : i64, scratch_operands = 4 : i64, tpu.core_type = #tpu.core_type<tc>, window_params = [{transform_indices = @transform_0, window_bounds = array<i64: 1, 8, 32>}, {pipeline_mode = #tpu.pipeline_mode<synchronous>, transform_indices = @transform_1, window_bounds = array<i64: 32, 32>}, {pipeline_mode = #tpu.pipeline_mode<synchronous>, transform_indices = @transform_2, window_bounds = array<i64: 32, 32>}, {pipeline_mode = #tpu.pipeline_mode<synchronous>, transform_indices = @transform_3, window_bounds = array<i64: 32, 32>}, {pipeline_mode = #tpu.pipeline_mode<synchronous>, transform_indices = @transform_4, window_bounds = array<i64: 32, 32>}, {pipeline_mode = #tpu.pipeline_mode<synchronous>, transform_indices = @transform_5, window_bounds = array<i64: 1, 32>}, {pipeline_mode = #tpu.pipeline_mode<synchronous>, transform_indices = @transform_6, window_bounds = array<i64: 1, 32>}, {pipeline_mode = #tpu.pipeline_mode<synchronous>, transform_indices = @transform_7, window_bounds = array<i64: 1, 32>}, {pipeline_mode = #tpu.pipeline_mode<synchronous>, transform_indices = @transform_8, window_bounds = array<i64: 1, 32>}, {pipeline_mode = #tpu.pipeline_mode<synchronous>, transform_indices = @transform_9, window_bounds = array<i64: 1, 32>}, {pipeline_mode = #tpu.pipeline_mode<synchronous>, transform_indices = @transform_10, window_bounds = array<i64: 1, 32>}, {pipeline_mode = #tpu.pipeline_mode<synchronous>, transform_indices = @transform_11, window_bounds = array<i64: 32, 128>}, {pipeline_mode = #tpu.pipeline_mode<synchronous>, transform_indices = @transform_12, window_bounds = array<i64: 1, 128>}, {pipeline_mode = #tpu.pipeline_mode<synchronous>, transform_indices = @transform_13, window_bounds = array<i64: 128, 32>}, {pipeline_mode = #tpu.pipeline_mode<synchronous>, transform_indices = @transform_14, window_bounds = array<i64: 1, 32>}, {pipeline_mode = #tpu.pipeline_mode<synchronous>, transform_indices = @transform_15, window_bounds = array<i64: 1, 32>}, {pipeline_mode = #tpu.pipeline_mode<synchronous>, transform_indices = @transform_16, window_bounds = array<i64: 1, 32>}, {transform_indices = @transform_17, window_bounds = array<i64: 1, 8, 32>}, {transform_indices = @transform_18, window_bounds = array<i64: 1, 1, 8>}]} {
    %c0 = arith.constant 0 : index
    %c0_0 = arith.constant 0 : index
    %c0_1 = arith.constant 0 : index
    %0 = vector.load %arg1[%c0, %c0_0, %c0_1] : memref<1x8x32xf32, #tpu.memory_space<vmem>>, vector<1x8x32xf32>
    %1 = vector.shape_cast %0 : vector<1x8x32xf32> to vector<8x32xf32>
    %2 = arith.truncf %1 : vector<8x32xf32> to vector<8x32xbf16>
    %c0_2 = arith.constant 0 : index
    %c0_3 = arith.constant 0 : index
    %3 = vector.load %arg2[%c0_2, %c0_3] : memref<32x32xbf16, #tpu.memory_space<vmem>>, vector<32x32xbf16>
    %cst = arith.constant dense<0.000000e+00> : vector<8x32xf32>
    %4 = tpu.matmul %2, %3, %cst {dimension_numbers = #tpu.dot_dimension_numbers<[1], [0], [0], [1], [0, 0, 1, 1], [], []>} : vector<8x32xbf16>, vector<32x32xbf16>, vector<8x32xf32> -> vector<8x32xf32>
    %c0_4 = arith.constant 0 : index
    %c0_5 = arith.constant 0 : index
    %5 = vector.load %arg6[%c0_4, %c0_5] : memref<1x32xf32, #tpu.memory_space<vmem>>, vector<1x32xf32>
    %6 = vector.broadcast %5 : vector<1x32xf32> to vector<8x32xf32>
    %7 = arith.addf %4, %6 : vector<8x32xf32>
    %cst_6 = arith.constant 0.353553385 : f32
    %8 = vector.broadcast %cst_6 : f32 to vector<8x32xf32>
    %9 = arith.mulf %7, %8 : vector<8x32xf32>
    %c0_7 = arith.constant 0 : index
    %c0_8 = arith.constant 0 : index
    %10 = vector.load %arg3[%c0_7, %c0_8] : memref<32x32xbf16, #tpu.memory_space<vmem>>, vector<32x32xbf16>
    %cst_9 = arith.constant dense<0.000000e+00> : vector<8x32xf32>
    %11 = tpu.matmul %2, %10, %cst_9 {dimension_numbers = #tpu.dot_dimension_numbers<[1], [0], [0], [1], [0, 0, 1, 1], [], []>} : vector<8x32xbf16>, vector<32x32xbf16>, vector<8x32xf32> -> vector<8x32xf32>
    %c0_10 = arith.constant 0 : index
    %c0_11 = arith.constant 0 : index
    %12 = vector.load %arg7[%c0_10, %c0_11] : memref<1x32xf32, #tpu.memory_space<vmem>>, vector<1x32xf32>
    %13 = vector.broadcast %12 : vector<1x32xf32> to vector<8x32xf32>
    %14 = arith.addf %11, %13 : vector<8x32xf32>
    %c0_12 = arith.constant 0 : index
    %c0_13 = arith.constant 0 : index
    %15 = vector.load %arg4[%c0_12, %c0_13] : memref<32x32xbf16, #tpu.memory_space<vmem>>, vector<32x32xbf16>
    %cst_14 = arith.constant dense<0.000000e+00> : vector<8x32xf32>
    %16 = tpu.matmul %2, %15, %cst_14 {dimension_numbers = #tpu.dot_dimension_numbers<[1], [0], [0], [1], [0, 0, 1, 1], [], []>} : vector<8x32xbf16>, vector<32x32xbf16>, vector<8x32xf32> -> vector<8x32xf32>
    %c0_15 = arith.constant 0 : index
    %c0_16 = arith.constant 0 : index
    %17 = vector.load %arg8[%c0_15, %c0_16] : memref<1x32xf32, #tpu.memory_space<vmem>>, vector<1x32xf32>
    %18 = vector.broadcast %17 : vector<1x32xf32> to vector<8x32xf32>
    %19 = arith.addf %16, %18 : vector<8x32xf32>
    %20 = vector.extract_strided_slice %9 {offsets = [0, 0], sizes = [8, 8], strides = [1, 1]} : vector<8x32xf32> to vector<8x8xf32>
    %21 = arith.truncf %20 : vector<8x8xf32> to vector<8x8xbf16>
    %c0_17 = arith.constant 0 : index
    %c0_18 = arith.constant 0 : index
    %c0_19 = arith.constant 0 : index
    %22 = vector.load %arg20[%c0_17, %c0_18, %c0_19] : memref<4x8x8xbf16, #tpu.memory_space<vmem>>, vector<1x8x8xbf16>
    %23 = vector.shape_cast %22 : vector<1x8x8xbf16> to vector<8x8xbf16>
    %24 = vector.shape_cast %21 : vector<8x8xbf16> to vector<1x8x8xbf16>
    tpu.vector_store %arg20[%c0_17, %c0_18, %c0_19], %24 {strides = array<i32>} : memref<4x8x8xbf16, #tpu.memory_space<vmem>>, vector<1x8x8xbf16>,
    %25 = vector.extract_strided_slice %14 {offsets = [0, 0], sizes = [8, 8], strides = [1, 1]} : vector<8x32xf32> to vector<8x8xf32>
    %26 = arith.truncf %25 : vector<8x8xf32> to vector<8x8xbf16>
    %c0_20 = arith.constant 0 : index
    %c0_21 = arith.constant 0 : index
    %c0_22 = arith.constant 0 : index
    %27 = vector.load %arg21[%c0_20, %c0_21, %c0_22] : memref<4x8x8xbf16, #tpu.memory_space<vmem>>, vector<1x8x8xbf16>
    %28 = vector.shape_cast %27 : vector<1x8x8xbf16> to vector<8x8xbf16>
    %29 = vector.shape_cast %26 : vector<8x8xbf16> to vector<1x8x8xbf16>
    tpu.vector_store %arg21[%c0_20, %c0_21, %c0_22], %29 {strides = array<i32>} : memref<4x8x8xbf16, #tpu.memory_space<vmem>>, vector<1x8x8xbf16>,
    %30 = vector.extract_strided_slice %19 {offsets = [0, 0], sizes = [8, 8], strides = [1, 1]} : vector<8x32xf32> to vector<8x8xf32>
    %31 = arith.truncf %30 : vector<8x8xf32> to vector<8x8xbf16>
    %c0_23 = arith.constant 0 : index
    %c0_24 = arith.constant 0 : index
    %c0_25 = arith.constant 0 : index
    %32 = vector.load %arg22[%c0_23, %c0_24, %c0_25] : memref<4x8x8xbf16, #tpu.memory_space<vmem>>, vector<1x8x8xbf16>
    %33 = vector.shape_cast %32 : vector<1x8x8xbf16> to vector<8x8xbf16>
    %34 = vector.shape_cast %31 : vector<8x8xbf16> to vector<1x8x8xbf16>
    tpu.vector_store %arg22[%c0_23, %c0_24, %c0_25], %34 {strides = array<i32>} : memref<4x8x8xbf16, #tpu.memory_space<vmem>>, vector<1x8x8xbf16>,
    %35 = vector.extract_strided_slice %9 {offsets = [0, 8], sizes = [8, 8], strides = [1, 1]} : vector<8x32xf32> to vector<8x8xf32>
    %36 = arith.truncf %35 : vector<8x8xf32> to vector<8x8xbf16>
    %c1 = arith.constant 1 : index
    %c0_26 = arith.constant 0 : index
    %c0_27 = arith.constant 0 : index
    %37 = vector.load %arg20[%c1, %c0_26, %c0_27] : memref<4x8x8xbf16, #tpu.memory_space<vmem>>, vector<1x8x8xbf16>
    %38 = vector.shape_cast %37 : vector<1x8x8xbf16> to vector<8x8xbf16>
    %39 = vector.shape_cast %36 : vector<8x8xbf16> to vector<1x8x8xbf16>
    tpu.vector_store %arg20[%c1, %c0_26, %c0_27], %39 {strides = array<i32>} : memref<4x8x8xbf16, #tpu.memory_space<vmem>>, vector<1x8x8xbf16>,
    %40 = vector.extract_strided_slice %14 {offsets = [0, 8], sizes = [8, 8], strides = [1, 1]} : vector<8x32xf32> to vector<8x8xf32>
    %41 = arith.truncf %40 : vector<8x8xf32> to vector<8x8xbf16>
    %c1_28 = arith.constant 1 : index
    %c0_29 = arith.constant 0 : index
    %c0_30 = arith.constant 0 : index
    %42 = vector.load %arg21[%c1_28, %c0_29, %c0_30] : memref<4x8x8xbf16, #tpu.memory_space<vmem>>, vector<1x8x8xbf16>
    %43 = vector.shape_cast %42 : vector<1x8x8xbf16> to vector<8x8xbf16>
    %44 = vector.shape_cast %41 : vector<8x8xbf16> to vector<1x8x8xbf16>
    tpu.vector_store %arg21[%c1_28, %c0_29, %c0_30], %44 {strides = array<i32>} : memref<4x8x8xbf16, #tpu.memory_space<vmem>>, vector<1x8x8xbf16>,
    %45 = vector.extract_strided_slice %19 {offsets = [0, 8], sizes = [8, 8], strides = [1, 1]} : vector<8x32xf32> to vector<8x8xf32>
    %46 = arith.truncf %45 : vector<8x8xf32> to vector<8x8xbf16>
    %c1_31 = arith.constant 1 : index
    %c0_32 = arith.constant 0 : index
    %c0_33 = arith.constant 0 : index
    %47 = vector.load %arg22[%c1_31, %c0_32, %c0_33] : memref<4x8x8xbf16, #tpu.memory_space<vmem>>, vector<1x8x8xbf16>
    %48 = vector.shape_cast %47 : vector<1x8x8xbf16> to vector<8x8xbf16>
    %49 = vector.shape_cast %46 : vector<8x8xbf16> to vector<1x8x8xbf16>
    tpu.vector_store %arg22[%c1_31, %c0_32, %c0_33], %49 {strides = array<i32>} : memref<4x8x8xbf16, #tpu.memory_space<vmem>>, vector<1x8x8xbf16>,
    %50 = vector.extract_strided_slice %9 {offsets = [0, 16], sizes = [8, 8], strides = [1, 1]} : vector<8x32xf32> to vector<8x8xf32>
    %51 = arith.truncf %50 : vector<8x8xf32> to vector<8x8xbf16>
    %c2 = arith.constant 2 : index
    %c0_34 = arith.constant 0 : index
    %c0_35 = arith.constant 0 : index
    %52 = vector.load %arg20[%c2, %c0_34, %c0_35] : memref<4x8x8xbf16, #tpu.memory_space<vmem>>, vector<1x8x8xbf16>
    %53 = vector.shape_cast %52 : vector<1x8x8xbf16> to vector<8x8xbf16>
    %54 = vector.shape_cast %51 : vector<8x8xbf16> to vector<1x8x8xbf16>
    tpu.vector_store %arg20[%c2, %c0_34, %c0_35], %54 {strides = array<i32>} : memref<4x8x8xbf16, #tpu.memory_space<vmem>>, vector<1x8x8xbf16>,
    %55 = vector.extract_strided_slice %14 {offsets = [0, 16], sizes = [8, 8], strides = [1, 1]} : vector<8x32xf32> to vector<8x8xf32>
    %56 = arith.truncf %55 : vector<8x8xf32> to vector<8x8xbf16>
    %c2_36 = arith.constant 2 : index
    %c0_37 = arith.constant 0 : index
    %c0_38 = arith.constant 0 : index
    %57 = vector.load %arg21[%c2_36, %c0_37, %c0_38] : memref<4x8x8xbf16, #tpu.memory_space<vmem>>, vector<1x8x8xbf16>
    %58 = vector.shape_cast %57 : vector<1x8x8xbf16> to vector<8x8xbf16>
    %59 = vector.shape_cast %56 : vector<8x8xbf16> to vector<1x8x8xbf16>
    tpu.vector_store %arg21[%c2_36, %c0_37, %c0_38], %59 {strides = array<i32>} : memref<4x8x8xbf16, #tpu.memory_space<vmem>>, vector<1x8x8xbf16>,
    %60 = vector.extract_strided_slice %19 {offsets = [0, 16], sizes = [8, 8], strides = [1, 1]} : vector<8x32xf32> to vector<8x8xf32>
    %61 = arith.truncf %60 : vector<8x8xf32> to vector<8x8xbf16>
    %c2_39 = arith.constant 2 : index
    %c0_40 = arith.constant 0 : index
    %c0_41 = arith.constant 0 : index
    %62 = vector.load %arg22[%c2_39, %c0_40, %c0_41] : memref<4x8x8xbf16, #tpu.memory_space<vmem>>, vector<1x8x8xbf16>
    %63 = vector.shape_cast %62 : vector<1x8x8xbf16> to vector<8x8xbf16>
    %64 = vector.shape_cast %61 : vector<8x8xbf16> to vector<1x8x8xbf16>
    tpu.vector_store %arg22[%c2_39, %c0_40, %c0_41], %64 {strides = array<i32>} : memref<4x8x8xbf16, #tpu.memory_space<vmem>>, vector<1x8x8xbf16>,
    %65 = vector.extract_strided_slice %9 {offsets = [0, 24], sizes = [8, 8], strides = [1, 1]} : vector<8x32xf32> to vector<8x8xf32>
    %66 = arith.truncf %65 : vector<8x8xf32> to vector<8x8xbf16>
    %c3 = arith.constant 3 : index
    %c0_42 = arith.constant 0 : index
    %c0_43 = arith.constant 0 : index
    %67 = vector.load %arg20[%c3, %c0_42, %c0_43] : memref<4x8x8xbf16, #tpu.memory_space<vmem>>, vector<1x8x8xbf16>
    %68 = vector.shape_cast %67 : vector<1x8x8xbf16> to vector<8x8xbf16>
    %69 = vector.shape_cast %66 : vector<8x8xbf16> to vector<1x8x8xbf16>
    tpu.vector_store %arg20[%c3, %c0_42, %c0_43], %69 {strides = array<i32>} : memref<4x8x8xbf16, #tpu.memory_space<vmem>>, vector<1x8x8xbf16>,
    %70 = vector.extract_strided_slice %14 {offsets = [0, 24], sizes = [8, 8], strides = [1, 1]} : vector<8x32xf32> to vector<8x8xf32>
    %71 = arith.truncf %70 : vector<8x8xf32> to vector<8x8xbf16>
    %c3_44 = arith.constant 3 : index
    %c0_45 = arith.constant 0 : index
    %c0_46 = arith.constant 0 : index
    %72 = vector.load %arg21[%c3_44, %c0_45, %c0_46] : memref<4x8x8xbf16, #tpu.memory_space<vmem>>, vector<1x8x8xbf16>
    %73 = vector.shape_cast %72 : vector<1x8x8xbf16> to vector<8x8xbf16>
    %74 = vector.shape_cast %71 : vector<8x8xbf16> to vector<1x8x8xbf16>
    tpu.vector_store %arg21[%c3_44, %c0_45, %c0_46], %74 {strides = array<i32>} : memref<4x8x8xbf16, #tpu.memory_space<vmem>>, vector<1x8x8xbf16>,
    %75 = vector.extract_strided_slice %19 {offsets = [0, 24], sizes = [8, 8], strides = [1, 1]} : vector<8x32xf32> to vector<8x8xf32>
    %76 = arith.truncf %75 : vector<8x8xf32> to vector<8x8xbf16>
    %c3_47 = arith.constant 3 : index
    %c0_48 = arith.constant 0 : index
    %c0_49 = arith.constant 0 : index
    %77 = vector.load %arg22[%c3_47, %c0_48, %c0_49] : memref<4x8x8xbf16, #tpu.memory_space<vmem>>, vector<1x8x8xbf16>
    %78 = vector.shape_cast %77 : vector<1x8x8xbf16> to vector<8x8xbf16>
    %79 = vector.shape_cast %76 : vector<8x8xbf16> to vector<1x8x8xbf16>
    tpu.vector_store %arg22[%c3_47, %c0_48, %c0_49], %79 {strides = array<i32>} : memref<4x8x8xbf16, #tpu.memory_space<vmem>>, vector<1x8x8xbf16>,
    %c0_50 = arith.constant 0 : index
    %c0_51 = arith.constant 0 : index
    %c0_52 = arith.constant 0 : index
    %80 = vector.load %arg20[%c0_50, %c0_51, %c0_52] : memref<4x8x8xbf16, #tpu.memory_space<vmem>>, vector<4x8x8xbf16>
    %c0_53 = arith.constant 0 : index
    %c0_54 = arith.constant 0 : index
    %c0_55 = arith.constant 0 : index
    %81 = vector.load %arg21[%c0_53, %c0_54, %c0_55] : memref<4x8x8xbf16, #tpu.memory_space<vmem>>, vector<4x8x8xbf16>
    %c0_56 = arith.constant 0 : index
    %c0_57 = arith.constant 0 : index
    %c0_58 = arith.constant 0 : index
    %82 = vector.load %arg22[%c0_56, %c0_57, %c0_58] : memref<4x8x8xbf16, #tpu.memory_space<vmem>>, vector<4x8x8xbf16>
    "tpu.trace_start"() <{level = 10 : i32, message = "htd,hsd->hts"}> : () -> ()
    %cst_59 = arith.constant dense<0.000000e+00> : vector<4x8x8xf32>
    %83 = tpu.matmul %80, %81, %cst_59 {dimension_numbers = #tpu.dot_dimension_numbers<[2], [2], [1], [1], [0, 0, 0, 1, 1, 1], [0], [0]>} : vector<4x8x8xbf16>, vector<4x8x8xbf16>, vector<4x8x8xf32> -> vector<4x8x8xf32>
    "tpu.trace_stop"() : () -> ()
    %cst_60 = arith.constant dense<0xFF800000> : vector<4x8xf32>
    %84 = vector.multi_reduction <maximumf>, %83, %cst_60 [2] : vector<4x8x8xf32> to vector<4x8xf32>
    %85 = vector.shape_cast %84 : vector<4x8xf32> to vector<4x8x1xf32>
    %86 = vector.broadcast %85 : vector<4x8x1xf32> to vector<4x8x8xf32>
    %87 = arith.subf %83, %86 : vector<4x8x8xf32>
    %88 = math.exp %87 : vector<4x8x8xf32>
    %cst_61 = arith.constant dense<0.000000e+00> : vector<4x8xf32>
    %89 = vector.multi_reduction <add>, %88, %cst_61 [2] : vector<4x8x8xf32> to vector<4x8xf32>
    %90 = vector.shape_cast %89 : vector<4x8xf32> to vector<4x8x1xf32>
    %91 = arith.mulf %88, %83 : vector<4x8x8xf32>
    %cst_62 = arith.constant dense<0.000000e+00> : vector<4x8xf32>
    %92 = vector.multi_reduction <add>, %91, %cst_62 [2] : vector<4x8x8xf32> to vector<4x8xf32>
    %93 = vector.shape_cast %92 : vector<4x8xf32> to vector<4x8x1xf32>
    %94 = tpu.reciprocal %90 {approx = true} : vector<4x8x1xf32> -> vector<4x8x1xf32>
    %95 = vector.shape_cast %85 : vector<4x8x1xf32> to vector<4x8xf32>
    %96 = vector.shape_cast %90 : vector<4x8x1xf32> to vector<4x8xf32>
    %97 = math.log %96 : vector<4x8xf32>
    %98 = arith.addf %95, %97 : vector<4x8xf32>
    %99 = vector.shape_cast %93 : vector<4x8x1xf32> to vector<4x8xf32>
    %100 = vector.shape_cast %94 : vector<4x8x1xf32> to vector<4x8xf32>
    %101 = arith.mulf %99, %100 : vector<4x8xf32>
    %102 = arith.subf %98, %101 : vector<4x8xf32>
    %cst_63 = arith.constant dense<0xFF800000> : vector<8xf32>
    %103 = vector.multi_reduction <maximumf>, %102, %cst_63 [0] : vector<4x8xf32> to vector<8xf32>
    %104 = vector.shape_cast %103 : vector<8xf32> to vector<1x8xf32>
    %c0_64 = arith.constant 0 : index
    %c0_65 = arith.constant 0 : index
    %c0_66 = arith.constant 0 : index
    %105 = vector.load %arg19[%c0_64, %c0_65, %c0_66] : memref<1x1x8xf32, #tpu.memory_space<vmem>>, vector<1x1x8xf32>
    %106 = vector.shape_cast %105 : vector<1x1x8xf32> to vector<1x8xf32>
    %107 = vector.shape_cast %104 : vector<1x8xf32> to vector<1x1x8xf32>
    tpu.vector_store %arg19[%c0_64, %c0_65, %c0_66], %107 {strides = array<i32>} : memref<1x1x8xf32, #tpu.memory_space<vmem>>, vector<1x1x8xf32>,
    %108 = arith.truncf %88 : vector<4x8x8xf32> to vector<4x8x8xbf16>
    "tpu.trace_start"() <{level = 10 : i32, message = "hts,hsd->htd"}> : () -> ()
    %cst_67 = arith.constant dense<0.000000e+00> : vector<4x8x8xf32>
    %109 = tpu.matmul %108, %82, %cst_67 {dimension_numbers = #tpu.dot_dimension_numbers<[2], [1], [1], [2], [0, 0, 0, 1, 1, 2], [0], [0]>} : vector<4x8x8xbf16>, vector<4x8x8xbf16>, vector<4x8x8xf32> -> vector<4x8x8xf32>
    "tpu.trace_stop"() : () -> ()
    %110 = vector.broadcast %94 : vector<4x8x1xf32> to vector<4x8x8xf32>
    %111 = arith.mulf %109, %110 : vector<4x8x8xf32>
    %112 = vector.extract_strided_slice %111 {offsets = [0, 0, 0], sizes = [1, 8, 8], strides = [1, 1, 1]} : vector<4x8x8xf32> to vector<1x8x8xf32>
    %113 = vector.shape_cast %112 : vector<1x8x8xf32> to vector<8x8xf32>
    %114 = arith.truncf %113 : vector<8x8xf32> to vector<8x8xbf16>
    %c0_68 = arith.constant 0 : index
    %c0_69 = arith.constant 0 : index
    %115 = vector.load %arg23[%c0_68, %c0_69] : memref<8x32xbf16, #tpu.memory_space<vmem>>, vector<8x8xbf16>
    tpu.vector_store %arg23[%c0_68, %c0_69], %114 {strides = array<i32>} : memref<8x32xbf16, #tpu.memory_space<vmem>>, vector<8x8xbf16>,
    %116 = vector.extract_strided_slice %111 {offsets = [1, 0, 0], sizes = [1, 8, 8], strides = [1, 1, 1]} : vector<4x8x8xf32> to vector<1x8x8xf32>
    %117 = vector.shape_cast %116 : vector<1x8x8xf32> to vector<8x8xf32>
    %118 = arith.truncf %117 : vector<8x8xf32> to vector<8x8xbf16>
    %c0_70 = arith.constant 0 : index
    %c8 = arith.constant 8 : index
    %119 = vector.load %arg23[%c0_70, %c8] : memref<8x32xbf16, #tpu.memory_space<vmem>>, vector<8x8xbf16>
    tpu.vector_store %arg23[%c0_70, %c8], %118 {strides = array<i32>} : memref<8x32xbf16, #tpu.memory_space<vmem>>, vector<8x8xbf16>,
    %120 = vector.extract_strided_slice %111 {offsets = [2, 0, 0], sizes = [1, 8, 8], strides = [1, 1, 1]} : vector<4x8x8xf32> to vector<1x8x8xf32>
    %121 = vector.shape_cast %120 : vector<1x8x8xf32> to vector<8x8xf32>
    %122 = arith.truncf %121 : vector<8x8xf32> to vector<8x8xbf16>
    %c0_71 = arith.constant 0 : index
    %c16 = arith.constant 16 : index
    %123 = vector.load %arg23[%c0_71, %c16] : memref<8x32xbf16, #tpu.memory_space<vmem>>, vector<8x8xbf16>
    tpu.vector_store %arg23[%c0_71, %c16], %122 {strides = array<i32>} : memref<8x32xbf16, #tpu.memory_space<vmem>>, vector<8x8xbf16>,
    %124 = vector.extract_strided_slice %111 {offsets = [3, 0, 0], sizes = [1, 8, 8], strides = [1, 1, 1]} : vector<4x8x8xf32> to vector<1x8x8xf32>
    %125 = vector.shape_cast %124 : vector<1x8x8xf32> to vector<8x8xf32>
    %126 = arith.truncf %125 : vector<8x8xf32> to vector<8x8xbf16>
    %c0_72 = arith.constant 0 : index
    %c24 = arith.constant 24 : index
    %127 = vector.load %arg23[%c0_72, %c24] : memref<8x32xbf16, #tpu.memory_space<vmem>>, vector<8x8xbf16>
    tpu.vector_store %arg23[%c0_72, %c24], %126 {strides = array<i32>} : memref<8x32xbf16, #tpu.memory_space<vmem>>, vector<8x8xbf16>,
    %c0_73 = arith.constant 0 : index
    %c0_74 = arith.constant 0 : index
    %128 = vector.load %arg23[%c0_73, %c0_74] : memref<8x32xbf16, #tpu.memory_space<vmem>>, vector<8x32xbf16>
    %c0_75 = arith.constant 0 : index
    %c0_76 = arith.constant 0 : index
    %129 = vector.load %arg5[%c0_75, %c0_76] : memref<32x32xbf16, #tpu.memory_space<vmem>>, vector<32x32xbf16>
    %cst_77 = arith.constant dense<0.000000e+00> : vector<8x32xf32>
    %130 = tpu.matmul %128, %129, %cst_77 {dimension_numbers = #tpu.dot_dimension_numbers<[1], [0], [0], [1], [0, 0, 1, 1], [], []>} : vector<8x32xbf16>, vector<32x32xbf16>, vector<8x32xf32> -> vector<8x32xf32>
    %c0_78 = arith.constant 0 : index
    %c0_79 = arith.constant 0 : index
    %131 = vector.load %arg9[%c0_78, %c0_79] : memref<1x32xf32, #tpu.memory_space<vmem>>, vector<1x32xf32>
    %132 = vector.broadcast %131 : vector<1x32xf32> to vector<8x32xf32>
    %133 = arith.addf %130, %132 : vector<8x32xf32>
    %134 = arith.addf %1, %133 : vector<8x32xf32>
    %c0_80 = arith.constant 0 : index
    %c0_81 = arith.constant 0 : index
    %135 = vector.load %arg10[%c0_80, %c0_81] : memref<1x32xf32, #tpu.memory_space<vmem>>, vector<1x32xf32>
    %c0_82 = arith.constant 0 : index
    %c0_83 = arith.constant 0 : index
    %136 = vector.load %arg11[%c0_82, %c0_83] : memref<1x32xf32, #tpu.memory_space<vmem>>, vector<1x32xf32>
    %cst_84 = arith.constant dense<0.000000e+00> : vector<8xf32>
    %137 = vector.multi_reduction <add>, %134, %cst_84 [1] : vector<8x32xf32> to vector<8xf32>
    %138 = vector.shape_cast %137 : vector<8xf32> to vector<8x1xf32>
    %cst_85 = arith.constant 3.200000e+01 : f32
    %139 = vector.broadcast %cst_85 : f32 to vector<8x1xf32>
    %140 = arith.divf %138, %139 : vector<8x1xf32>
    %141 = vector.broadcast %140 : vector<8x1xf32> to vector<8x32xf32>
    %142 = arith.subf %134, %141 : vector<8x32xf32>
    %143 = arith.mulf %142, %142 : vector<8x32xf32>
    %cst_86 = arith.constant dense<0.000000e+00> : vector<8xf32>
    %144 = vector.multi_reduction <add>, %143, %cst_86 [1] : vector<8x32xf32> to vector<8xf32>
    %145 = vector.shape_cast %144 : vector<8xf32> to vector<8x1xf32>
    %cst_87 = arith.constant 3.200000e+01 : f32
    %146 = vector.broadcast %cst_87 : f32 to vector<8x1xf32>
    %147 = arith.divf %145, %146 : vector<8x1xf32>
    %cst_88 = arith.constant 9.99999974E-6 : f32
    %148 = vector.broadcast %cst_88 : f32 to vector<8x1xf32>
    %149 = arith.addf %147, %148 : vector<8x1xf32>
    %150 = math.rsqrt %149 : vector<8x1xf32>
    %151 = vector.broadcast %150 : vector<8x1xf32> to vector<8x32xf32>
    %152 = arith.mulf %142, %151 : vector<8x32xf32>
    %153 = vector.broadcast %135 : vector<1x32xf32> to vector<8x32xf32>
    %154 = arith.mulf %152, %153 : vector<8x32xf32>
    %155 = vector.broadcast %136 : vector<1x32xf32> to vector<8x32xf32>
    %156 = arith.addf %154, %155 : vector<8x32xf32>
    %157 = arith.truncf %156 : vector<8x32xf32> to vector<8x32xbf16>
    %c0_89 = arith.constant 0 : index
    %c0_90 = arith.constant 0 : index
    %158 = vector.load %arg12[%c0_89, %c0_90] : memref<32x128xbf16, #tpu.memory_space<vmem>>, vector<32x128xbf16>
    %cst_91 = arith.constant dense<0.000000e+00> : vector<8x128xf32>
    %159 = tpu.matmul %157, %158, %cst_91 {dimension_numbers = #tpu.dot_dimension_numbers<[1], [0], [0], [1], [0, 0, 1, 1], [], []>} : vector<8x32xbf16>, vector<32x128xbf16>, vector<8x128xf32> -> vector<8x128xf32>
    %c0_92 = arith.constant 0 : index
    %c0_93 = arith.constant 0 : index
    %160 = vector.load %arg13[%c0_92, %c0_93] : memref<1x128xf32, #tpu.memory_space<vmem>>, vector<1x128xf32>
    %161 = vector.broadcast %160 : vector<1x128xf32> to vector<8x128xf32>
    %162 = arith.addf %159, %161 : vector<8x128xf32>
    %cst_94 = arith.constant 0.000000e+00 : f32
    %163 = vector.broadcast %cst_94 : f32 to vector<8x128xf32>
    %164 = arith.maximumf %162, %163 : vector<8x128xf32>
    %165 = arith.truncf %164 : vector<8x128xf32> to vector<8x128xbf16>
    %c0_95 = arith.constant 0 : index
    %c0_96 = arith.constant 0 : index
    %166 = vector.load %arg14[%c0_95, %c0_96] : memref<128x32xbf16, #tpu.memory_space<vmem>>, vector<128x32xbf16>
    %cst_97 = arith.constant dense<0.000000e+00> : vector<8x32xf32>
    %167 = tpu.matmul %165, %166, %cst_97 {dimension_numbers = #tpu.dot_dimension_numbers<[1], [0], [0], [1], [0, 0, 1, 1], [], []>} : vector<8x128xbf16>, vector<128x32xbf16>, vector<8x32xf32> -> vector<8x32xf32>
    %168 = arith.addf %156, %167 : vector<8x32xf32>
    %c0_98 = arith.constant 0 : index
    %c0_99 = arith.constant 0 : index
    %169 = vector.load %arg15[%c0_98, %c0_99] : memref<1x32xf32, #tpu.memory_space<vmem>>, vector<1x32xf32>
    %170 = vector.broadcast %169 : vector<1x32xf32> to vector<8x32xf32>
    %171 = arith.addf %168, %170 : vector<8x32xf32>
    %c0_100 = arith.constant 0 : index
    %c0_101 = arith.constant 0 : index
    %172 = vector.load %arg16[%c0_100, %c0_101] : memref<1x32xf32, #tpu.memory_space<vmem>>, vector<1x32xf32>
    %c0_102 = arith.constant 0 : index
    %c0_103 = arith.constant 0 : index
    %173 = vector.load %arg17[%c0_102, %c0_103] : memref<1x32xf32, #tpu.memory_space<vmem>>, vector<1x32xf32>
    %cst_104 = arith.constant dense<0.000000e+00> : vector<8xf32>
    %174 = vector.multi_reduction <add>, %171, %cst_104 [1] : vector<8x32xf32> to vector<8xf32>
    %175 = vector.shape_cast %174 : vector<8xf32> to vector<8x1xf32>
    %cst_105 = arith.constant 3.200000e+01 : f32
    %176 = vector.broadcast %cst_105 : f32 to vector<8x1xf32>
    %177 = arith.divf %175, %176 : vector<8x1xf32>
    %178 = vector.broadcast %177 : vector<8x1xf32> to vector<8x32xf32>
    %179 = arith.subf %171, %178 : vector<8x32xf32>
    %180 = arith.mulf %179, %179 : vector<8x32xf32>
    %cst_106 = arith.constant dense<0.000000e+00> : vector<8xf32>
    %181 = vector.multi_reduction <add>, %180, %cst_106 [1] : vector<8x32xf32> to vector<8xf32>
    %182 = vector.shape_cast %181 : vector<8xf32> to vector<8x1xf32>
    %cst_107 = arith.constant 3.200000e+01 : f32
    %183 = vector.broadcast %cst_107 : f32 to vector<8x1xf32>
    %184 = arith.divf %182, %183 : vector<8x1xf32>
    %cst_108 = arith.constant 9.99999974E-6 : f32
    %185 = vector.broadcast %cst_108 : f32 to vector<8x1xf32>
    %186 = arith.addf %184, %185 : vector<8x1xf32>
    %187 = math.rsqrt %186 : vector<8x1xf32>
    %188 = vector.broadcast %187 : vector<8x1xf32> to vector<8x32xf32>
    %189 = arith.mulf %179, %188 : vector<8x32xf32>
    %190 = vector.broadcast %172 : vector<1x32xf32> to vector<8x32xf32>
    %191 = arith.mulf %189, %190 : vector<8x32xf32>
    %192 = vector.broadcast %173 : vector<1x32xf32> to vector<8x32xf32>
    %193 = arith.addf %191, %192 : vector<8x32xf32>
    %c0_109 = arith.constant 0 : index
    %c0_110 = arith.constant 0 : index
    %c0_111 = arith.constant 0 : index
    %194 = vector.load %arg18[%c0_109, %c0_110, %c0_111] : memref<1x8x32xf32, #tpu.memory_space<vmem>>, vector<1x8x32xf32>
    %195 = vector.shape_cast %194 : vector<1x8x32xf32> to vector<8x32xf32>
    %196 = vector.shape_cast %193 : vector<8x32xf32> to vector<1x8x32xf32>
    tpu.vector_store %arg18[%c0_109, %c0_110, %c0_111], %196 {strides = array<i32>} : memref<1x8x32xf32, #tpu.memory_space<vmem>>, vector<1x8x32xf32>,
    return
  }
  func.func @transform_0(%arg0: i32) -> (i32, i32, i32) {
    %c0_i32 = arith.constant 0 : i32
    %c0_i32_0 = arith.constant 0 : i32
    %c0_i32_1 = arith.constant 0 : i32
    return %arg0, %c0_i32, %c0_i32_0 : i32, i32, i32
  }
  func.func @transform_1(%arg0: i32) -> (i32, i32) {
    %c0_i32 = arith.constant 0 : i32
    %c0_i32_0 = arith.constant 0 : i32
    %c0_i32_1 = arith.constant 0 : i32
    return %c0_i32, %c0_i32_0 : i32, i32
  }
  func.func @transform_2(%arg0: i32) -> (i32, i32) {
    %c0_i32 = arith.constant 0 : i32
    %c0_i32_0 = arith.constant 0 : i32
    %c0_i32_1 = arith.constant 0 : i32
    return %c0_i32, %c0_i32_0 : i32, i32
  }
  func.func @transform_3(%arg0: i32) -> (i32, i32) {
    %c0_i32 = arith.constant 0 : i32
    %c0_i32_0 = arith.constant 0 : i32
    %c0_i32_1 = arith.constant 0 : i32
    return %c0_i32, %c0_i32_0 : i32, i32
  }
  func.func @transform_4(%arg0: i32) -> (i32, i32) {
    %c0_i32 = arith.constant 0 : i32
    %c0_i32_0 = arith.constant 0 : i32
    %c0_i32_1 = arith.constant 0 : i32
    return %c0_i32, %c0_i32_0 : i32, i32
  }
  func.func @transform_5(%arg0: i32) -> (i32, i32) {
    %c0_i32 = arith.constant 0 : i32
    %c0_i32_0 = arith.constant 0 : i32
    %c0_i32_1 = arith.constant 0 : i32
    return %c0_i32, %c0_i32_0 : i32, i32
  }
  func.func @transform_6(%arg0: i32) -> (i32, i32) {
    %c0_i32 = arith.constant 0 : i32
    %c0_i32_0 = arith.constant 0 : i32
    %c0_i32_1 = arith.constant 0 : i32
    return %c0_i32, %c0_i32_0 : i32, i32
  }
  func.func @transform_7(%arg0: i32) -> (i32, i32) {
    %c0_i32 = arith.constant 0 : i32
    %c0_i32_0 = arith.constant 0 : i32
    %c0_i32_1 = arith.constant 0 : i32
    return %c0_i32, %c0_i32_0 : i32, i32
  }
  func.func @transform_8(%arg0: i32) -> (i32, i32) {
    %c0_i32 = arith.constant 0 : i32
    %c0_i32_0 = arith.constant 0 : i32
    %c0_i32_1 = arith.constant 0 : i32
    return %c0_i32, %c0_i32_0 : i32, i32
  }
  func.func @transform_9(%arg0: i32) -> (i32, i32) {
    %c0_i32 = arith.constant 0 : i32
    %c0_i32_0 = arith.constant 0 : i32
    %c0_i32_1 = arith.constant 0 : i32
    return %c0_i32, %c0_i32_0 : i32, i32
  }
  func.func @transform_10(%arg0: i32) -> (i32, i32) {
    %c0_i32 = arith.constant 0 : i32
    %c0_i32_0 = arith.constant 0 : i32
    %c0_i32_1 = arith.constant 0 : i32
    return %c0_i32, %c0_i32_0 : i32, i32
  }
  func.func @transform_11(%arg0: i32) -> (i32, i32) {
    %c0_i32 = arith.constant 0 : i32
    %c0_i32_0 = arith.constant 0 : i32
    %c0_i32_1 = arith.constant 0 : i32
    return %c0_i32, %c0_i32_0 : i32, i32
  }
  func.func @transform_12(%arg0: i32) -> (i32, i32) {
    %c0_i32 = arith.constant 0 : i32
    %c0_i32_0 = arith.constant 0 : i32
    %c0_i32_1 = arith.constant 0 : i32
    return %c0_i32, %c0_i32_0 : i32, i32
  }
  func.func @transform_13(%arg0: i32) -> (i32, i32) {
    %c0_i32 = arith.constant 0 : i32
    %c0_i32_0 = arith.constant 0 : i32
    %c0_i32_1 = arith.constant 0 : i32
    return %c0_i32, %c0_i32_0 : i32, i32
  }
  func.func @transform_14(%arg0: i32) -> (i32, i32) {
    %c0_i32 = arith.constant 0 : i32
    %c0_i32_0 = arith.constant 0 : i32
    %c0_i32_1 = arith.constant 0 : i32
    return %c0_i32, %c0_i32_0 : i32, i32
  }
  func.func @transform_15(%arg0: i32) -> (i32, i32) {
    %c0_i32 = arith.constant 0 : i32
    %c0_i32_0 = arith.constant 0 : i32
    %c0_i32_1 = arith.constant 0 : i32
    return %c0_i32, %c0_i32_0 : i32, i32
  }
  func.func @transform_16(%arg0: i32) -> (i32, i32) {
    %c0_i32 = arith.constant 0 : i32
    %c0_i32_0 = arith.constant 0 : i32
    %c0_i32_1 = arith.constant 0 : i32
    return %c0_i32, %c0_i32_0 : i32, i32
  }
  func.func @transform_17(%arg0: i32) -> (i32, i32, i32) {
    %c0_i32 = arith.constant 0 : i32
    %c0_i32_0 = arith.constant 0 : i32
    %c0_i32_1 = arith.constant 0 : i32
    return %arg0, %c0_i32, %c0_i32_0 : i32, i32, i32
  }
  func.func @transform_18(%arg0: i32) -> (i32, i32, i32) {
    %c0_i32 = arith.constant 0 : i32
    %c0_i32_0 = arith.constant 0 : i32
    %c0_i32_1 = arith.constant 0 : i32
    return %arg0, %c0_i32, %c0_i32_0 : i32, i32, i32
  }
}

</mosaic_0001>

<bundles_post_ra>
// kernel: tpu_custom_call.1
= control target key start
LH: loop header
LB: loop body
LE: loop exit
PB: predicated region body
PF: predicated region fallthrough
CT: control target
= control target key end

     0   :  { %s4181_s0 = inlined_call_operand.hbm [shape: f32[2,8,32], index: 0, kind: input, shape index: {}]   ;;  %s4182_s1 = inlined_call_operand.hbm [shape: bf16[32,32], index: 1, kind: input, shape index: {}]   ;;  %s4183_s2 = inlined_call_operand.hbm [shape: bf16[32,32], index: 2, kind: input, shape index: {}]   ;;  %s4184_s3 = inlined_call_operand.hbm [shape: bf16[32,32], index: 3, kind: input, shape index: {}]   ;;  %s4185_s4 = inlined_call_operand.hbm [shape: bf16[32,32], index: 4, kind: input, shape index: {}]   ;;  %s4186_s5 = inlined_call_operand.hbm [shape: f32[1,32], index: 5, kind: input, shape index: {}]   ;;  %s4187_s6 = inlined_call_operand.hbm [shape: f32[1,32], index: 6, kind: input, shape index: {}]   ;;  %s4188_s7 = inlined_call_operand.hbm [shape: f32[1,32], index: 7, kind: input, shape index: {}]   ;;  %s4189_s8 = inlined_call_operand.hbm [shape: f32[1,32], index: 8, kind: input, shape index: {}]   ;;  %s4190_s9 = inlined_call_operand.hbm [shape: f32[1,32], index: 9, kind: input, shape index: {}]   ;;  %s4191_s10 = inlined_call_operand.hbm [shape: f32[1,32], index: 10, kind: input, shape index: {}]   ;;  %s4192_s11 = inlined_call_operand.hbm [shape: bf16[32,128], index: 11, kind: input, shape index: {}]   ;;  %s4193_s12 = inlined_call_operand.hbm [shape: f32[1,128], index: 12, kind: input, shape index: {}]   ;;  %s4194_s13 = inlined_call_operand.hbm [shape: bf16[128,32], index: 13, kind: input, shape index: {}]   ;;  %s4195_s14 = inlined_call_operand.hbm [shape: f32[1,32], index: 14, kind: input, shape index: {}]   ;;  %s4196_s15 = inlined_call_operand.hbm [shape: f32[1,32], index: 15, kind: input, shape index: {}]   ;;  %s4197_s16 = inlined_call_operand.hbm [shape: f32[1,32], index: 16, kind: input, shape index: {}]   ;;  %s4198_s17 = inlined_call_operand.hbm [shape: f32[2,8,32], index: 17, kind: output, shape index: {0}]   ;;  %s4199_s18 = inlined_call_operand.hbm [shape: f32[2,1,8], index: 18, kind: output, shape index: {1}]  }
   0x1   :  { %4220 = sst [smem:[#allocation53_spill]] %s4181_s0 }
   0x2   :  { %4221 = sst [smem:[#allocation54_spill]] %s4182_s1 }
   0x3   :  { %4222 = sst [smem:[#allocation55_spill]] %s4183_s2 }
   0x4   :  { %4223 = sst [smem:[#allocation56_spill]] %s4184_s3 }
   0x5   :  { %4224 = sst [smem:[#allocation57_spill]] %s4185_s4 }
   0x6   :  { %4225 = sst [smem:[#allocation58_spill]] %s4186_s5 }
   0x7   :  { %4226 = sst [smem:[#allocation59_spill]] %s4187_s6 }
   0x8   :  { %4227 = sst [smem:[#allocation60_spill]] %s4188_s7 }
   0x9   :  { %4228 = sst [smem:[#allocation61_spill]] %s4198_s17 }
   0xa   :  { %4229 = sst [smem:[#allocation62_spill]] %s4199_s18 }
   0xb   :  { %24 = vsyncpa [#allocation7], 0 }
   0xc   :  { %26 = vsyncpa [#allocation7 + $0x1], 0 }
   0xd   :  { %27 = vsyncpa [#allocation10], 0 }
   0xe   :  { %28 = vsyncpa [#allocation13], 0 }
   0xf   :  { %29 = vsyncpa [#allocation16], 0 }
  0x10   :  { %30 = vsyncpa [#allocation19], 0 }
  0x11   :  { %31 = vsyncpa [#allocation22], 0 }
  0x12   :  { %32 = vsyncpa [#allocation25], 0 }
  0x13   :  { %33 = vsyncpa [#allocation28], 0 }
  0x14   :  { %34 = vsyncpa [#allocation31], 0 }
  0x15   :  { %35 = vsyncpa [#allocation8], 0 }
  0x16   :  { %37 = vsyncpa [#allocation8 + $0x1], 0 }
  0x17   :  { %38 = vsyncpa [#allocation35], 0 }
  0x18   :  { %40 = vsyncpa [#allocation35 + $0x1], 0  ;;  %s3418_s27 = smov 0   ;;  %s3420_s28 = smov 0  }
  0x19   :  { %s3422_s29 = smov 0   ;;  %s3424_s30 = smov 0  }
  0x1a LB: > { %4230 = sst [smem:[#allocation47_spill]] %s3280_s27  ;;  %s3294_s0 = smov [#allocation9]   ;;  %s3292_s30 = sphi %s3424_s30, %s4291_s30   ;;  %s3288_s29 = sphi %s3422_s29, %s4290_s29   ;;  %s3284_s28 = sphi %s3420_s28, %s4287_s28   ;;  %s3280_s27 = sphi %s3418_s27, %s4289_s27  }
  0x1b   : > { %4231 = sst [smem:[#allocation48_spill]] %s3284_s28  ;;  %s477_s19 = sshll.u32 %s3294_s0, 4  ;;  %s3444_s19 = int_to_ptr.vmem [resolvable:$true] %s477_s19 }
  0x1c   : > { %4232 = sst [smem:[#allocation49_spill]] %s3288_s29  ;;  %s3439_s1 = sadd.s32 4294967295, %s3292_s30  }
  0x1d   : > { %4233 = sst [smem:[#allocation50_spill]] %s3292_s30  ;;  %p2171_p0 = scmp.ge.s32.totalorder %s3292_s30, 1 }
  0x1e   : > { %4234 = sst [smem:[#allocation51_spill]] %s3439_s1  ;;  %p4215_p1 = scmp.eq.s32.totalorder %s3439_s1, 0 }
  0x1f   : > { %p465_p2 = scmp.lt.s32.totalorder %s3292_s30, 3  ;;  %s3295_s21 = smov [#allocation12]  }
  0x20   : > { %s503_s22 = sshll.u32 %s3295_s21, 4  ;;  %s3296_s23 = smov [#allocation15]   ;;  %s3459_s22 = int_to_ptr.vmem [resolvable:$true] %s503_s22 }
  0x21   : > { %p3446_p3 = pnand %p2171_p0, %p465_p2  ;;  %s530_s24 = sshll.u32 %s3296_s23, 4  ;;  %s3461_s24 = int_to_ptr.vmem [resolvable:$true] %s530_s24 }
  0x22   : > { %s4238_s0 = sld [smem:[#allocation54_spill]] }
  0x23   : > { %s4235_s20 = scalar_select %p3446_p3, 1, 0 }
  0x24   : > { %p2486_p5 = pneg %p3446_p3 }
  0x25   : > { %4236 = sst [smem:[#allocation52_spill]] %s4235_s20 }
  0x26   : > { %p3455_p6 = pnand %p2486_p5, %p4215_p1 }
  0x28   : > { %s2684_s17 = scalar_lea.hbm %s4238_s0, 256  ;;  %p3471_p8 = pneg %p3455_p6 }
  0x29   : > { %p2685_p7 = scmp.ne.s32.totalorder %s4238_s0, %s2684_s17  ;;  %p2691_p11 = scmp.lt.u32.totalorder %s2684_s17, %s4238_s0 }
  0x2b   : > { %p2687_p9 = pnand %p3471_p8, %p2685_p7 }
  0x2d   : > { %p2688_p10 = pneg %p2687_p9 }
  0x2f   : > { %p2693_p12 = pnand %p2691_p11, %p2688_p10 }
  0x31   : > { %2696 = shalt.err (!%p2693_p12)
}
  0x32   : > { %s2697_s18 = scalar_lea.vmem %s3444_s19, 256  ;;  %p2705_p5 = scmp.lt.s32.totalorder %s3444_s19, %s3444_s19 }
  0x33   : > { %p2698_p13 = scmp.ne.s32.totalorder %s3444_s19, %s2697_s18  ;;  %p2706_p4 = scmp.lt.s32.totalorder %s2697_s18, %s2697_s18 }
  0x35   : > { %p2700_p0 = pnand %p2698_p13, %p3471_p8  ;;  %p2707_p7 = por %p2706_p4, %p2705_p5 }
  0x37   : > { %p2701_p2 = pneg %p2700_p0 }
  0x39   : > { %p2708_p9 = pnand %p2707_p7, %p2701_p2 }
  0x3b   : > { %2711 = shalt.err (!%p2708_p9)
}
  0x3c   : > { %s4213_s20 = smov 64   ;;  %s3298_s17 = smov 4  }
  0x3d   : > { %2489 = dma.hbm_to_vmem [thread:$0]  (!%p3455_p6), %s4238_s0, 256, %s3444_s19, [#allocation10], %s4213_s20, %s4213_s20, %s3298_s17  }
  0x3e   : > { %s4240_s3 = sld [smem:[#allocation56_spill]] }
  0x44   : > { %s2712_s18 = scalar_lea.hbm %s4240_s3, 256 }
  0x45   : > { %p2713_p4 = scmp.ne.s32.totalorder %s4240_s3, %s2712_s18  ;;  %p2719_p12 = scmp.lt.u32.totalorder %s2712_s18, %s4240_s3 }
  0x47   : > { %p2715_p10 = pnand %p2713_p4, %p3471_p8 }
  0x49   : > { %p2716_p11 = pneg %p2715_p10 }
  0x4b   : > { %p2721_p13 = pnand %p2719_p12, %p2716_p11 }
  0x4d   : > { %2724 = shalt.err (!%p2721_p13)
}
  0x4e   : > { %s2725_s19 = scalar_lea.vmem %s3459_s22, 256  ;;  %p2733_p7 = scmp.lt.s32.totalorder %s3459_s22, %s3459_s22 }
  0x4f   : > { %p2726_p0 = scmp.ne.s32.totalorder %s3459_s22, %s2725_s19  ;;  %p2734_p9 = scmp.lt.s32.totalorder %s2725_s19, %s2725_s19 }
  0x51   : > { %p2728_p2 = pnand %p2726_p0, %p3471_p8  ;;  %p2735_p4 = por %p2734_p9, %p2733_p7 }
  0x53   : > { %p2729_p5 = pneg %p2728_p2 }
  0x55   : > { %p2736_p10 = pnand %p2735_p4, %p2729_p5 }
  0x57   : > { %2739 = shalt.err (!%p2736_p10)
}
  0x58   : > { %2495 = dma.hbm_to_vmem [thread:$0]  (!%p3455_p6), %s4240_s3, 256, %s3459_s22, [#allocation13], %s4213_s20, %s4213_s20, %s3298_s17  }
  0x59   : > { %s4241_s5 = sld [smem:[#allocation58_spill]] }
  0x5f   : > { %s2740_s1 = scalar_lea.hbm %s4241_s5, 16 }
  0x60   : > { %p2741_p11 = scmp.ne.s32.totalorder %s4241_s5, %s2740_s1  ;;  %p2747_p0 = scmp.lt.u32.totalorder %s2740_s1, %s4241_s5 }
  0x62   : > { %p2743_p12 = pnand %p2741_p11, %p3471_p8 }
  0x64   : > { %p2744_p13 = pneg %p2743_p12 }
  0x66   : > { %p2749_p2 = pnand %p2747_p0, %p2744_p13 }
  0x68   : > { %2752 = shalt.err (!%p2749_p2)
}
  0x69   : > { %s2753_s22 = scalar_lea.vmem %s3461_s24, 16  ;;  %s2760_s19 = scalar_lea.vmem %s3461_s24, 32 }
  0x6a   : > { %p2754_p5 = scmp.ne.s32.totalorder %s3461_s24, %s2753_s22  ;;  %p2761_p4 = scmp.lt.s32.totalorder %s3461_s24, %s3461_s24 }
  0x6b   : > { %p2762_p10 = scmp.lt.s32.totalorder %s2760_s19, %s2753_s22 }
  0x6c   : > { %p2756_p7 = pnand %p2754_p5, %p3471_p8 }
  0x6d   : > { %p2763_p11 = por %p2762_p10, %p2761_p4 }
  0x6e   : > { %p2757_p9 = pneg %p2756_p7 }
  0x70   : > { %p2764_p12 = pnand %p2763_p11, %p2757_p9 }
  0x72   : > { %2767 = shalt.err (!%p2764_p12)
}
  0x73   : > { %2501 = dma.hbm_to_vmem [thread:$0]  (!%p3455_p6), %s4241_s5, 16, %s3461_s24, [#allocation16]  }
  0x74   : > { %s3299_s29 = smov [#allocation18]   ;;  %s3300_s1 = smov [#allocation21]  }
  0x75   : > { %s552_s30 = sshll.u32 %s3299_s29, 4  ;;  %s574_s25 = sshll.u32 %s3300_s1, 4  ;;  %s553_s30 = int_to_ptr.vmem [resolvable:$true] %s552_s30  ;;  %s575_s25 = int_to_ptr.vmem [resolvable:$true] %s574_s25 }
  0x76   : > { %s4242_s7 = sld [smem:[#allocation60_spill]] }
  0x7c   : > { %s2768_s18 = scalar_lea.hbm %s4242_s7, 16 }
  0x7d   : > { %p2769_p13 = scmp.ne.s32.totalorder %s4242_s7, %s2768_s18  ;;  %p2775_p5 = scmp.lt.u32.totalorder %s2768_s18, %s4242_s7 }
  0x7f   : > { %p2771_p0 = pnand %p2769_p13, %p3471_p8 }
  0x81   : > { %p2772_p2 = pneg %p2771_p0 }
  0x83   : > { %p2777_p7 = pnand %p2775_p5, %p2772_p2 }
  0x85   : > { %2780 = shalt.err (!%p2777_p7)
}
  0x86   : > { %s2781_s24 = scalar_lea.vmem %s553_s30, 16  ;;  %s2788_s28 = scalar_lea.vmem %s553_s30, 32 }
  0x87   : > { %p2782_p9 = scmp.ne.s32.totalorder %s553_s30, %s2781_s24  ;;  %p2789_p11 = scmp.lt.s32.totalorder %s553_s30, %s553_s30 }
  0x88   : > { %p2790_p12 = scmp.lt.s32.totalorder %s2788_s28, %s2781_s24 }
  0x89   : > { %p2784_p4 = pnand %p2782_p9, %p3471_p8 }
  0x8a   : > { %p2791_p1 = por %p2790_p12, %p2789_p11 }
  0x8b   : > { %p2785_p10 = pneg %p2784_p4 }
  0x8d   : > { %p2792_p3 = pnand %p2791_p1, %p2785_p10 }
  0x8f   : > { %2795 = shalt.err (!%p2792_p3)
}
  0x90   : > { %2507 = dma.hbm_to_vmem [thread:$0]  (!%p3455_p6), %s4242_s7, 16, %s553_s30, [#allocation19]  }
  0x91   : > { %s2796_s23 = scalar_lea.hbm %s4190_s9, 16 }
  0x92   : > { %p2797_p13 = scmp.ne.s32.totalorder %s4190_s9, %s2796_s23  ;;  %p2803_p3 = scmp.lt.u32.totalorder %s2796_s23, %s4190_s9 }
  0x94   : > { %p2799_p0 = pnand %p2797_p13, %p3471_p8 }
  0x96   : > { %p2800_p1 = pneg %p2799_p0 }
  0x98   : > { %p2805_p2 = pnand %p2803_p3, %p2800_p1 }
  0x9a   : > { %2808 = shalt.err (!%p2805_p2)
}
  0x9b   : > { %s2809_s24 = scalar_lea.vmem %s575_s25, 16  ;;  %s2816_s30 = scalar_lea.vmem %s575_s25, 32 }
  0x9c   : > { %p2810_p5 = scmp.ne.s32.totalorder %s575_s25, %s2809_s24  ;;  %p2817_p4 = scmp.lt.s32.totalorder %s575_s25, %s575_s25 }
  0x9d   : > { %p2818_p10 = scmp.lt.s32.totalorder %s2816_s30, %s2809_s24 }
  0x9e   : > { %p2812_p7 = pnand %p2810_p5, %p3471_p8 }
  0x9f   : > { %p2819_p11 = por %p2818_p10, %p2817_p4 }
  0xa0   : > { %p2813_p9 = pneg %p2812_p7 }
  0xa2   : > { %p2820_p12 = pnand %p2819_p11, %p2813_p9 }
  0xa4   : > { %2823 = shalt.err (!%p2820_p12)
}
  0xa5   : > { %2513 = dma.hbm_to_vmem [thread:$0]  (!%p3455_p6), %s4190_s9, 16, %s575_s25, [#allocation22]  }
  0xa6   : > { %s3301_s1 = smov [#allocation24]   ;;  %s3302_s26 = smov [#allocation27]  }
  0xa7   : > { %s595_s20 = sshll.u32 %s3301_s1, 4  ;;  %s619_s23 = sshll.u32 %s3302_s26, 4  ;;  %s596_s20 = int_to_ptr.vmem [resolvable:$true] %s595_s20  ;;  %s620_s23 = int_to_ptr.vmem [resolvable:$true] %s619_s23 }
  0xa8   : > { %s2824_s19 = scalar_lea.hbm %s4192_s11, 256 }
  0xa9   : > { %p2825_p13 = scmp.ne.s32.totalorder %s4192_s11, %s2824_s19  ;;  %p2831_p3 = scmp.lt.u32.totalorder %s2824_s19, %s4192_s11 }
  0xab   : > { %p2827_p0 = pnand %p2825_p13, %p3471_p8 }
  0xad   : > { %p2828_p1 = pneg %p2827_p0 }
  0xaf   : > { %p2833_p2 = pnand %p2831_p3, %p2828_p1 }
  0xb1   : > { %2836 = shalt.err (!%p2833_p2)
}
  0xb2   : > { %s2837_s25 = scalar_lea.vmem %s596_s20, 256  ;;  %p2845_p4 = scmp.lt.s32.totalorder %s596_s20, %s596_s20 }
  0xb3   : > { %p2838_p5 = scmp.ne.s32.totalorder %s596_s20, %s2837_s25  ;;  %p2846_p10 = scmp.lt.s32.totalorder %s2837_s25, %s2837_s25 }
  0xb5   : > { %p2840_p7 = pnand %p2838_p5, %p3471_p8  ;;  %p2847_p11 = por %p2846_p10, %p2845_p4 }
  0xb7   : > { %p2841_p9 = pneg %p2840_p7 }
  0xb9   : > { %p2848_p12 = pnand %p2847_p11, %p2841_p9 }
  0xbb   : > { %2851 = shalt.err (!%p2848_p12)
}
  0xbc   : > { %s4243_s29 = smov 64   ;;  %s2852_s19 = scalar_lea.hbm %s4194_s13, 1024 }
  0xbd   : > { %2519 = dma.hbm_to_vmem [thread:$0]  (!%p3455_p6), %s4192_s11, 256, %s596_s20, [#allocation25], %s4243_s29, %s4243_s29, %s3298_s17  }
  0xbe   : > { %p2853_p13 = scmp.ne.s32.totalorder %s4194_s13, %s2852_s19  ;;  %p2859_p3 = scmp.lt.u32.totalorder %s2852_s19, %s4194_s13 }
  0xc0   : > { %p2855_p0 = pnand %p2853_p13, %p3471_p8 }
  0xc2   : > { %p2856_p1 = pneg %p2855_p0 }
  0xc4   : > { %p2861_p2 = pnand %p2859_p3, %p2856_p1 }
  0xc6   : > { %2864 = shalt.err (!%p2861_p2)
}
  0xc7   : > { %s2865_s25 = scalar_lea.vmem %s620_s23, 1024  ;;  %p2873_p4 = scmp.lt.s32.totalorder %s620_s23, %s620_s23 }
  0xc8   : > { %p2866_p5 = scmp.ne.s32.totalorder %s620_s23, %s2865_s25  ;;  %p2874_p10 = scmp.lt.s32.totalorder %s2865_s25, %s2865_s25 }
  0xca   : > { %p2868_p7 = pnand %p2866_p5, %p3471_p8  ;;  %p2875_p11 = por %p2874_p10, %p2873_p4 }
  0xcc   : > { %p2869_p9 = pneg %p2868_p7 }
  0xce   : > { %p2876_p12 = pnand %p2875_p11, %p2869_p9 }
  0xd0   : > { %2879 = shalt.err (!%p2876_p12)
}
  0xd1   : > { %2525 = dma.hbm_to_vmem [thread:$0]  (!%p3455_p6), %s4194_s13, 1024, %s620_s23, [#allocation28], %s4243_s29, %s4243_s29, %s3298_s17  }
  0xd2   : > { %s3303_s26 = smov [#allocation30]   ;;  %s3304_s22 = smov [#allocation11]  }
  0xd3   : > { %s644_s18 = sshll.u32 %s3303_s26, 4  ;;  %s490_s19 = sshll.u32 %s3304_s22, 4  ;;  %s645_s18 = int_to_ptr.vmem [resolvable:$true] %s644_s18  ;;  %s491_s19 = int_to_ptr.vmem [resolvable:$true] %s490_s19 }
  0xd4   : > { %s2880_s30 = scalar_lea.hbm %s4196_s15, 16 }
  0xd5   : > { %p2881_p13 = scmp.ne.s32.totalorder %s4196_s15, %s2880_s30  ;;  %p2887_p3 = scmp.lt.u32.totalorder %s2880_s30, %s4196_s15 }
  0xd7   : > { %p2883_p0 = pnand %p2881_p13, %p3471_p8 }
  0xd9   : > { %p2884_p1 = pneg %p2883_p0 }
  0xdb   : > { %p2889_p2 = pnand %p2887_p3, %p2884_p1 }
  0xdd   : > { %2892 = shalt.err (!%p2889_p2)
}
  0xde   : > { %s2893_s23 = scalar_lea.vmem %s645_s18, 16  ;;  %s2900_s1 = scalar_lea.vmem %s645_s18, 32 }
  0xdf   : > { %p2894_p5 = scmp.ne.s32.totalorder %s645_s18, %s2893_s23  ;;  %p2901_p4 = scmp.lt.s32.totalorder %s645_s18, %s645_s18 }
  0xe0   : > { %p2902_p10 = scmp.lt.s32.totalorder %s2900_s1, %s2893_s23 }
  0xe1   : > { %p2896_p7 = pnand %p2894_p5, %p3471_p8 }
  0xe2   : > { %p2903_p11 = por %p2902_p10, %p2901_p4 }
  0xe3   : > { %p2897_p9 = pneg %p2896_p7 }
  0xe5   : > { %p2904_p12 = pnand %p2903_p11, %p2897_p9 }
  0xe7   : > { %2907 = shalt.err (!%p2904_p12)
}
  0xe8   : > { %2531 = dma.hbm_to_vmem [thread:$0]  (!%p3455_p6), %s4196_s15, 16, %s645_s18, [#allocation31]  }
  0xe9   : > { %s4244_s24 = sld [smem:[#allocation55_spill]] }
  0xef   : > { %s2908_s30 = scalar_lea.hbm %s4244_s24, 256 }
  0xf0   : > { %p2909_p13 = scmp.ne.s32.totalorder %s4244_s24, %s2908_s30  ;;  %p2915_p3 = scmp.lt.u32.totalorder %s2908_s30, %s4244_s24 }
  0xf2   : > { %p2911_p0 = pnand %p2909_p13, %p3471_p8 }
  0xf4   : > { %p2912_p1 = pneg %p2911_p0 }
  0xf6   : > { %p2917_p2 = pnand %p2915_p3, %p2912_p1 }
  0xf8   : > { %2920 = shalt.err (!%p2917_p2)
}
  0xf9   : > { %s2921_s1 = scalar_lea.vmem %s491_s19, 256  ;;  %p2929_p4 = scmp.lt.s32.totalorder %s491_s19, %s491_s19 }
  0xfa   : > { %p2922_p5 = scmp.ne.s32.totalorder %s491_s19, %s2921_s1  ;;  %p2930_p10 = scmp.lt.s32.totalorder %s2921_s1, %s2921_s1 }
  0xfc   : > { %p2924_p7 = pnand %p2922_p5, %p3471_p8  ;;  %p2931_p11 = por %p2930_p10, %p2929_p4 }
  0xfe   : > { %p2925_p9 = pneg %p2924_p7 }
 0x100   : > { %p2932_p12 = pnand %p2931_p11, %p2925_p9 }
 0x102   : > { %2935 = shalt.err (!%p2932_p12)
}
 0x103   : > { %2492 = dma.hbm_to_vmem [thread:$0]  (!%p3455_p6), %s4244_s24, 256, %s491_s19, [#allocation10], %s4243_s29, %s4243_s29, %s3298_s17  }
 0x104   : > { %s3305_s22 = smov [#allocation14]   ;;  %s3306_s27 = smov [#allocation17]  }
 0x105   : > { %s516_s0 = sshll.u32 %s3305_s22, 4  ;;  %s541_s30 = sshll.u32 %s3306_s27, 4  ;;  %s517_s0 = int_to_ptr.vmem [resolvable:$true] %s516_s0  ;;  %s542_s30 = int_to_ptr.vmem [resolvable:$true] %s541_s30 }
 0x106   : > { %s4245_s4 = sld [smem:[#allocation57_spill]] }
 0x10c   : > { %s2936_s20 = scalar_lea.hbm %s4245_s4, 256 }
 0x10d   : > { %p2937_p13 = scmp.ne.s32.totalorder %s4245_s4, %s2936_s20  ;;  %p2943_p3 = scmp.lt.u32.totalorder %s2936_s20, %s4245_s4 }
 0x10f   : > { %p2939_p0 = pnand %p2937_p13, %p3471_p8 }
 0x111   : > { %p2940_p1 = pneg %p2939_p0 }
 0x113   : > { %p2945_p2 = pnand %p2943_p3, %p2940_p1 }
 0x115   : > { %2948 = shalt.err (!%p2945_p2)
}
 0x116   : > { %s2949_s19 = scalar_lea.vmem %s517_s0, 256  ;;  %p2957_p4 = scmp.lt.s32.totalorder %s517_s0, %s517_s0 }
 0x117   : > { %p2950_p5 = scmp.ne.s32.totalorder %s517_s0, %s2949_s19  ;;  %p2958_p10 = scmp.lt.s32.totalorder %s2949_s19, %s2949_s19 }
 0x119   : > { %p2952_p7 = pnand %p2950_p5, %p3471_p8  ;;  %p2959_p11 = por %p2958_p10, %p2957_p4 }
 0x11b   : > { %p2953_p9 = pneg %p2952_p7 }
 0x11d   : > { %p2960_p12 = pnand %p2959_p11, %p2953_p9 }
 0x11f   : > { %2963 = shalt.err (!%p2960_p12)
}
 0x120   : > { %2498 = dma.hbm_to_vmem [thread:$0]  (!%p3455_p6), %s4245_s4, 256, %s517_s0, [#allocation13], %s4243_s29, %s4243_s29, %s3298_s17  }
 0x121   : > { %s4246_s6 = sld [smem:[#allocation59_spill]] }
 0x127   : > { %s2964_s28 = scalar_lea.hbm %s4246_s6, 16 }
 0x128   : > { %p2965_p13 = scmp.ne.s32.totalorder %s4246_s6, %s2964_s28  ;;  %p2971_p3 = scmp.lt.u32.totalorder %s2964_s28, %s4246_s6 }
 0x12a   : > { %p2967_p0 = pnand %p2965_p13, %p3471_p8 }
 0x12c   : > { %p2968_p1 = pneg %p2967_p0 }
 0x12e   : > { %p2973_p2 = pnand %p2971_p3, %p2968_p1 }
 0x130   : > { %2976 = shalt.err (!%p2973_p2)
}
 0x131   : > { %s2977_s18 = scalar_lea.vmem %s542_s30, 16  ;;  %s2984_s17 = scalar_lea.vmem %s542_s30, 32 }
 0x132   : > { %p2978_p5 = scmp.ne.s32.totalorder %s542_s30, %s2977_s18  ;;  %p2985_p4 = scmp.lt.s32.totalorder %s542_s30, %s542_s30 }
 0x133   : > { %p2986_p10 = scmp.lt.s32.totalorder %s2984_s17, %s2977_s18 }
 0x134   : > { %p2980_p7 = pnand %p2978_p5, %p3471_p8 }
 0x135   : > { %p2987_p11 = por %p2986_p10, %p2985_p4 }
 0x136   : > { %p2981_p9 = pneg %p2980_p7 }
 0x138   : > { %p2988_p12 = pnand %p2987_p11, %p2981_p9 }
 0x13a   : > { %2991 = shalt.err (!%p2988_p12)
}
 0x13b   : > { %2504 = dma.hbm_to_vmem [thread:$0]  (!%p3455_p6), %s4246_s6, 16, %s542_s30, [#allocation16]  }
 0x13c   : > { %s3307_s19 = smov [#allocation20]   ;;  %s3308_s26 = smov [#allocation23]  }
 0x13d   : > { %s563_s3 = sshll.u32 %s3307_s19, 4  ;;  %s585_s22 = sshll.u32 %s3308_s26, 4  ;;  %s564_s3 = int_to_ptr.vmem [resolvable:$true] %s563_s3  ;;  %s586_s22 = int_to_ptr.vmem [resolvable:$true] %s585_s22 }
 0x13e   : > { %s2992_s25 = scalar_lea.hbm %s4189_s8, 16 }
 0x13f   : > { %p2993_p13 = scmp.ne.s32.totalorder %s4189_s8, %s2992_s25  ;;  %p2999_p3 = scmp.lt.u32.totalorder %s2992_s25, %s4189_s8 }
 0x141   : > { %p2995_p0 = pnand %p2993_p13, %p3471_p8 }
 0x143   : > { %p2996_p1 = pneg %p2995_p0 }
 0x145   : > { %p3001_p2 = pnand %p2999_p3, %p2996_p1 }
 0x147   : > { %3004 = shalt.err (!%p3001_p2)
}
 0x148   : > { %s3005_s30 = scalar_lea.vmem %s564_s3, 16  ;;  %s3012_s17 = scalar_lea.vmem %s564_s3, 32 }
 0x149   : > { %p3006_p5 = scmp.ne.s32.totalorder %s564_s3, %s3005_s30  ;;  %p3013_p4 = scmp.lt.s32.totalorder %s564_s3, %s564_s3 }
 0x14a   : > { %p3014_p10 = scmp.lt.s32.totalorder %s3012_s17, %s3005_s30 }
 0x14b   : > { %p3008_p7 = pnand %p3006_p5, %p3471_p8 }
 0x14c   : > { %p3015_p11 = por %p3014_p10, %p3013_p4 }
 0x14d   : > { %p3009_p9 = pneg %p3008_p7 }
 0x14f   : > { %p3016_p12 = pnand %p3015_p11, %p3009_p9 }
 0x151   : > { %3019 = shalt.err (!%p3016_p12)
}
 0x152   : > { %2510 = dma.hbm_to_vmem [thread:$0]  (!%p3455_p6), %s4189_s8, 16, %s564_s3, [#allocation19]  }
 0x153   : > { %s3020_s27 = scalar_lea.hbm %s4191_s10, 16 }
 0x154   : > { %p3021_p13 = scmp.ne.s32.totalorder %s4191_s10, %s3020_s27  ;;  %p3027_p3 = scmp.lt.u32.totalorder %s3020_s27, %s4191_s10 }
 0x156   : > { %p3023_p0 = pnand %p3021_p13, %p3471_p8 }
 0x158   : > { %p3024_p1 = pneg %p3023_p0 }
 0x15a   : > { %p3029_p2 = pnand %p3027_p3, %p3024_p1 }
 0x15c   : > { %3032 = shalt.err (!%p3029_p2)
}
 0x15d   : > { %s3033_s1 = scalar_lea.vmem %s586_s22, 16  ;;  %s3040_s3 = scalar_lea.vmem %s586_s22, 32 }
 0x15e   : > { %p3034_p5 = scmp.ne.s32.totalorder %s586_s22, %s3033_s1  ;;  %p3041_p4 = scmp.lt.s32.totalorder %s586_s22, %s586_s22 }
 0x15f   : > { %p3042_p10 = scmp.lt.s32.totalorder %s3040_s3, %s3033_s1 }
 0x160   : > { %p3036_p7 = pnand %p3034_p5, %p3471_p8 }
 0x161   : > { %p3043_p11 = por %p3042_p10, %p3041_p4 }
 0x162   : > { %p3037_p9 = pneg %p3036_p7 }
 0x164   : > { %p3044_p12 = pnand %p3043_p11, %p3037_p9 }
 0x166   : > { %3047 = shalt.err (!%p3044_p12)
}
 0x167   : > { %2516 = dma.hbm_to_vmem [thread:$0]  (!%p3455_p6), %s4191_s10, 16, %s586_s22, [#allocation22]  }
 0x168   : > { %s3309_s17 = smov [#allocation26]   ;;  %s3310_s0 = smov [#allocation29]  }
 0x169   : > { %s609_s29 = sshll.u32 %s3309_s17, 4  ;;  %s633_s19 = sshll.u32 %s3310_s0, 4  ;;  %s610_s29 = int_to_ptr.vmem [resolvable:$true] %s609_s29  ;;  %s634_s19 = int_to_ptr.vmem [resolvable:$true] %s633_s19 }
 0x16a   : > { %s3048_s28 = scalar_lea.hbm %s4193_s12, 16 }
 0x16b   : > { %p3049_p13 = scmp.ne.s32.totalorder %s4193_s12, %s3048_s28  ;;  %p3055_p3 = scmp.lt.u32.totalorder %s3048_s28, %s4193_s12 }
 0x16d   : > { %p3051_p0 = pnand %p3049_p13, %p3471_p8 }
 0x16f   : > { %p3052_p1 = pneg %p3051_p0 }
 0x171   : > { %p3057_p2 = pnand %p3055_p3, %p3052_p1 }
 0x173   : > { %3060 = shalt.err (!%p3057_p2)
}
 0x174   : > { %s3061_s22 = scalar_lea.vmem %s610_s29, 16  ;;  %s3068_s3 = scalar_lea.vmem %s610_s29, 32 }
 0x175   : > { %p3062_p5 = scmp.ne.s32.totalorder %s610_s29, %s3061_s22  ;;  %p3069_p4 = scmp.lt.s32.totalorder %s610_s29, %s610_s29 }
 0x176   : > { %p3070_p10 = scmp.lt.s32.totalorder %s3068_s3, %s3061_s22 }
 0x177   : > { %p3064_p7 = pnand %p3062_p5, %p3471_p8 }
 0x178   : > { %p3071_p11 = por %p3070_p10, %p3069_p4 }
 0x179   : > { %p3065_p9 = pneg %p3064_p7 }
 0x17b   : > { %p3072_p12 = pnand %p3071_p11, %p3065_p9 }
 0x17d   : > { %3075 = shalt.err (!%p3072_p12)
}
 0x17e   : > { %2522 = dma.hbm_to_vmem [thread:$0]  (!%p3455_p6), %s4193_s12, 16, %s610_s29, [#allocation25]  }
 0x17f   : > { %s3076_s26 = scalar_lea.hbm %s4195_s14, 16 }
 0x180   : > { %p3077_p13 = scmp.ne.s32.totalorder %s4195_s14, %s3076_s26  ;;  %p3083_p3 = scmp.lt.u32.totalorder %s3076_s26, %s4195_s14 }
 0x182   : > { %p3079_p0 = pnand %p3077_p13, %p3471_p8 }
 0x184   : > { %p3080_p1 = pneg %p3079_p0 }
 0x186   : > { %p3085_p2 = pnand %p3083_p3, %p3080_p1 }
 0x188   : > { %3088 = shalt.err (!%p3085_p2)
}
 0x189   : > { %s3089_s23 = scalar_lea.vmem %s634_s19, 16  ;;  %s3096_s29 = scalar_lea.vmem %s634_s19, 32 }
 0x18a   : > { %p3090_p5 = scmp.ne.s32.totalorder %s634_s19, %s3089_s23  ;;  %p3097_p4 = scmp.lt.s32.totalorder %s634_s19, %s634_s19 }
 0x18b   : > { %p3098_p10 = scmp.lt.s32.totalorder %s3096_s29, %s3089_s23 }
 0x18c   : > { %p3092_p7 = pnand %p3090_p5, %p3471_p8 }
 0x18d   : > { %p3099_p11 = por %p3098_p10, %p3097_p4 }
 0x18e   : > { %p3093_p9 = pneg %p3092_p7 }
 0x190   : > { %p3100_p12 = pnand %p3099_p11, %p3093_p9 }
 0x192   : > { %3103 = shalt.err (!%p3100_p12)
}
 0x193   : > { %2528 = dma.hbm_to_vmem [thread:$0]  (!%p3455_p6), %s4195_s14, 16, %s634_s19, [#allocation28]  }
 0x194   : > { %s3311_s3 = smov [#allocation32]   ;;  %s3104_s0 = scalar_lea.hbm %s4197_s16, 16 }
 0x195   : > { %s655_s18 = sshll.u32 %s3311_s3, 4  ;;  %p3105_p13 = scmp.ne.s32.totalorder %s4197_s16, %s3104_s0  ;;  %s656_s18 = int_to_ptr.vmem [resolvable:$true] %s655_s18 }
 0x196   : > { %p3111_p3 = scmp.lt.u32.totalorder %s3104_s0, %s4197_s16 }
 0x197   : > { %p3107_p0 = pnand %p3105_p13, %p3471_p8 }
 0x199   : > { %p3108_p1 = pneg %p3107_p0 }
 0x19b   : > { %p3113_p2 = pnand %p3111_p3, %p3108_p1 }
 0x19d   : > { %3116 = shalt.err (!%p3113_p2)
}
 0x19e   : > { %s3117_s19 = scalar_lea.vmem %s656_s18, 16  ;;  %s3124_s20 = scalar_lea.vmem %s656_s18, 32 }
 0x19f   : > { %p3118_p5 = scmp.ne.s32.totalorder %s656_s18, %s3117_s19  ;;  %p3125_p4 = scmp.lt.s32.totalorder %s656_s18, %s656_s18 }
 0x1a0   : > { %p3126_p10 = scmp.lt.s32.totalorder %s3124_s20, %s3117_s19 }
 0x1a1   : > { %p3120_p7 = pnand %p3118_p5, %p3471_p8 }
 0x1a2   : > { %p3127_p11 = por %p3126_p10, %p3125_p4 }
 0x1a3   : > { %p3121_p9 = pneg %p3120_p7 }
 0x1a5   : > { %p3128_p12 = pnand %p3127_p11, %p3121_p9 }
 0x1a7   : > { %3131 = shalt.err (!%p3128_p12)
}
 0x1a8   : > { %s4247_s1 = sld [smem:[#allocation50_spill]]  ;;  %s4248_s22 = sld [smem:[#allocation49_spill]] }
 0x1a9   : > { %s4249_s3 = sld [smem:[#allocation48_spill]]  ;;  %s4250_s21 = sld [smem:[#allocation47_spill]] }
 0x1aa   : > { %s4251_s30 = sld [smem:[#allocation51_spill]] }
 0x1ab   : > { %2534 = dma.hbm_to_vmem [thread:$0]  (!%p3455_p6), %s4197_s16, 16, %s656_s18, [#allocation31]  }
 0x1ae   : > { %s2170_s17 = sadd.s32 4294967294, %s4247_s1   ;;  %s3793_s2 = sadd.s32 1, %s4247_s1  }
 0x1af   : > { %s50_s0 = ssub.s32 %s4247_s1, %s3793_s2  ;;  %s53_s26 = sadd.s32 1, %s4248_s22 }
 0x1b0   : > { %p51_p8 = scmp.eq.s32.totalorder %s50_s0, 0  ;;  %p60_p13 = scmp.ne.s32.totalorder %s4248_s22, %s4249_s3 }
 0x1b1   : > { %p61_p0 = scmp.eq.s32.totalorder %s4247_s1, 0  ;;  %p66_p1 = scmp.ne.s32.totalorder %s4249_s3, %s4250_s21 }
 0x1b2   : > { %s3804_s27 = scalar_select %p51_p8, %s4248_s22, %s53_s26  }
 0x1b3   : > { %p3806_p3 = por %p61_p0, %p60_p13  ;;  %p4253_p2 = scmp.eq.s32.totalorder %s4251_s30, 0 }
 0x1b4   : > { %p426_p5 = scmp.eq.s32.totalorder %s4251_s30, 1  ;;  %p432_p7 = scmp.eq.s32.totalorder %s2170_s17, 1 }
 0x1b5   : > { %p3812_p6 = por %p4253_p2, %p66_p1  ;;  %p2562_p9 = scmp.lt.s32.totalorder %s4247_s1, 2 }
 0x1b6   : > { %s666_s25 = sand.u32 1, %s4248_s22   ;;  %p3819_p4 = por %p426_p5, %p60_p13 }
 0x1b7   : > { %p3823_p10 = por %p432_p7, %p66_p1  ;;  %s2189_s23 = sshll.u32 %s666_s25, 3 }
 0x1b8   : > { %s4255_s19 = scalar_select %p3819_p4, 1, 0 }
 0x1b9   : > { %s4256_s20 = scalar_select %p3823_p10, 1, 0 }
 0x1ba   : > { %s2190_s29 = sshll.u32 %s4247_s1, 7  ;;  %s4257_s0 = sld [smem:[#allocation53_spill]] }
 0x1bb   : > { %s670_s22 = scalar_lea.vmem [#allocation6], %s2189_s23  ;;  %p3837_p11 = pnand %p2562_p9, %p3806_p3 }
 0x1bc   : > { %s677_s30 = sshll.u32 %s670_s22, 4  ;;  %s667_s1 = scalar_lea.sflag [#allocation7], %s666_s25  ;;  %s3833_s30 = int_to_ptr.vmem [resolvable:$true] %s677_s30 }
 0x1bd   : > { %p3134_p8 = pneg %p3837_p11 }
 0x1c0   : > { %s3831_s26 = scalar_lea.hbm %s4257_s0, %s2190_s29  ;;  %s3137_s3 = scalar_lea.hbm %s4257_s0, 256 }
 0x1c1   : > { %s3132_s4 = scalar_lea.hbm %s3831_s26, 128  ;;  %p3138_p1 = scmp.lt.u32.totalorder %s3831_s26, %s4257_s0 }
 0x1c2   : > { %p3133_p12 = scmp.ne.s32.totalorder %s3831_s26, %s3132_s4  ;;  %p3139_p3 = scmp.lt.u32.totalorder %s3137_s3, %s3132_s4 }
 0x1c3   : > { %p3141_p5 = scmp.lt.u32.totalorder %s3132_s4, %s3831_s26 }
 0x1c4   : > { %p3135_p13 = pnand %p3134_p8, %p3133_p12  ;;  %p3140_p2 = por %p3139_p3, %p3138_p1 }
 0x1c6   : > { %p3136_p0 = pneg %p3135_p13  ;;  %p3142_p7 = por %p3141_p5, %p3140_p2 }
 0x1c8   : > { %p3143_p9 = pnand %p3142_p7, %p3136_p0 }
 0x1ca   : > { %3146 = shalt.err (!%p3143_p9)
}
 0x1cb   : > { %s3147_s25 = scalar_lea.vmem %s3833_s30, 128  ;;  %s3312_s22 = smov [#allocation6]  }
 0x1cc   : > { %p3148_p12 = scmp.ne.s32.totalorder %s3833_s30, %s3147_s25  ;;  %s3152_s23 = sshll.u32 %s3312_s22, 4  ;;  %s3153_s23 = int_to_ptr.vmem [resolvable:$false] %s3152_s23 }
 0x1cd   : > { %s3154_s29 = scalar_lea.vmem %s3153_s23, 256  ;;  %p3155_p4 = scmp.lt.s32.totalorder %s3833_s30, %s3153_s23 }
 0x1ce   : > { %p3150_p13 = pnand %p3148_p12, %p3134_p8  ;;  %p3156_p1 = scmp.lt.s32.totalorder %s3154_s29, %s3147_s25 }
 0x1d0   : > { %p3151_p10 = pneg %p3150_p13  ;;  %p3157_p3 = por %p3156_p1, %p3155_p4 }
 0x1d2   : > { %p3158_p2 = pnand %p3157_p3, %p3151_p10 }
 0x1d4   : > { %3161 = shalt.err (!%p3158_p2)
}
 0x1d5   : > { %2538 = dma.hbm_to_vmem [thread:$0]  (!%p3837_p11), %s3831_s26, 128, %s3833_s30, %s667_s1  }
 0x1d6   : > { %s4259_s4 = sld [smem:[#allocation52_spill]] }
 0x1dc   : > { %p4260_p0 = scmp.ne.s32.totalorder %s4259_s4, 0 }
 0x1dd   : > { %s4261_s3 = sld [smem:[#allocation48_spill]] (!%p4260_p0) }
 0x1de   : > { %686 = sbr.rel (%p4260_p0) target bundleno = 2918 (0xb66), region = 88 }
 0x1e3   : > { %s3869_s28 = sand.u32 (!%p4260_p0), 1, %s4261_s3  }
 0x1e4   : > { %s2192_s21 = sshll.u32 (!%p4260_p0), %s3869_s28, 3  ;;  %s689_s25 = scalar_lea.sflag (!%p4260_p0), [#allocation7], %s3869_s28 }
 0x1e5   : > { %s692_s22 = scalar_lea.vmem [#allocation6], %s2192_s21 }
 0x1e6   : > { %3235 = dma.done.wait (%p3812_p6), %s689_s25, 128  }
 0x1e7   : > { %3237 = vsyncadd (%p3812_p6), %s689_s25, 4294967168  ;;  %s4262_s26 = sld [smem:[#allocation51_spill]] }
 0x1ed   : > { %p4263_p4 = scmp.eq.s32.totalorder %s4262_s26, 0 }
 0x1ef   : > { %3239 = dma.done.wait (%p4263_p4), [#allocation10], 512   ;;  %p4264_p10 = pmov %p4263_p4 }
 0x1f0   : > { %p4265_p11 = pmov %p4263_p4 }
 0x1f1   : > { %3241 = vsyncadd (%p4264_p10), [#allocation10], 4294966784 }
 0x1f2   : > { %3243 = dma.done.wait (%p4265_p11), [#allocation13], 512   ;;  %p4266_p8 = pmov %p4263_p4 }
 0x1f3   : > { %p4267_p5 = pmov %p4263_p4 }
 0x1f4   : > { %3245 = vsyncadd (%p4266_p8), [#allocation13], 4294966784 }
 0x1f5   : > { %3247 = dma.done.wait (%p4267_p5), [#allocation16], 32   ;;  %p4268_p7 = pmov %p4263_p4 }
 0x1f6   : > { %p4269_p6 = pmov %p4263_p4 }
 0x1f7   : > { %3249 = vsyncadd (%p4268_p7), [#allocation16], 4294967264 }
 0x1f8   : > { %3251 = dma.done.wait (%p4269_p6), [#allocation19], 32   ;;  %p4270_p9 = pmov %p4263_p4 }
 0x1f9   : > { %p4271_p12 = pmov %p4263_p4 }
 0x1fa   : > { %3253 = vsyncadd (%p4270_p9), [#allocation19], 4294967264 }
 0x1fb   : > { %3255 = dma.done.wait (%p4271_p12), [#allocation22], 32   ;;  %p4272_p13 = pmov %p4263_p4 }
 0x1fc   : > { %p4273_p1 = pmov %p4263_p4 }
 0x1fd   : > { %3257 = vsyncadd (%p4272_p13), [#allocation22], 4294967264 }
 0x1fe   : > { %3259 = dma.done.wait (%p4273_p1), [#allocation25], 272   ;;  %p4274_p3 = pmov %p4273_p1 }
 0x1ff   : > { %p4275_p2 = pmov %p4273_p1 }
 0x200   : > { %3261 = vsyncadd (%p4274_p3), [#allocation25], 4294967024 }
 0x201   : > { %3263 = dma.done.wait (%p4275_p2), [#allocation28], 1040   ;;  %p4276_p0 = pmov %p4273_p1 }
 0x203   : > { %3265 = vsyncadd (%p4276_p0), [#allocation28], 4294966256  ;;  %p4277_p4 = pmov %p4276_p0 }
 0x204   : > { %p4278_p10 = pmov %p4276_p0 }
 0x205   : > { %3267 = dma.done.wait (%p4277_p4), [#allocation31], 32  }
 0x206   : > { %3269 = vsyncadd (%p4278_p10), [#allocation31], 4294967264  ;;  %v3313_v0 = vmov 0.0   ;;  %vm3314_vm0 = vmmov 0   ;;  %v2638_v1 = vld [vmem:[#allocation9] sm:$0xff]   ;;  %v2639_v2 = vld [vmem:[#allocation9 + $0x8] sm:$0xff]  }
 0x207   : > { %2308 = vmatprep.subr.bf16.mxu0 %v3313_v0  ;;  %2312 = vmatprep.mubr.msk.bf16.mxu0 %vm3314_vm0, %v3313_v0  ;;  %v3917_v3 = vld [vmem:[%s692_s22] sm:$0xff]  ;;  %vm839_vm1 = vcmask 261120   ;;  %v2642_v7 = vld [vmem:[#allocation12] sm:$0xff]   ;;  %v2643_v8 = vld [vmem:[#allocation12 + $0x8] sm:$0xff]   ;;  %vm1011_vm2 = vcmask 60416   ;;  %s3315_s18 = smov 120  }
 0x208   : > { %2332 = vmatprep.subr.bf16.mxu1 %v3313_v0  ;;  %2334 = vmatprep.mubr.msk.bf16.mxu1 %vm3314_vm0, %v3313_v0  ;;  %v2640_v4 = vld [vmem:[#allocation11] sm:$0xff]   ;;  %v815_v5 = vpack.c.bf16 %v3917_v3, %v3917_v3  ;;  %v2641_v6 = vld [vmem:[#allocation11 + $0x8] sm:$0xff]   ;;  %v2210_v9 = vld [vmem:[#allocation15] ss:$0 sm:$0xff]  ;;  %s3316_s30 = smov 104   ;;  %s3317_s17 = smov 112  }
 0x209   : > { %2309 = vmatpush3.bf16.msra.mxu0 %v2638_v1  ;;  %v2214_v17 = vld [vmem:[#allocation17] ss:$0 sm:$0xff]  ;;  %vm1083_vm3 = vcmask 64512   ;;  %v2218_v27 = vld [vmem:[#allocation18] ss:$0 sm:$0xff]  ;;  %vm1364_vm4 = vcmask 1043456  }
 0x20a   : > { %2310 = vmatprep.subr.bf16.mxu0 %v3313_v0  ;;  %s3318_s1 = smov 8   ;;  %s3319_s23 = smov 16   ;;  %vm1559_vm5 = vcmask 126016   ;;  %vm1568_vm6 = vcmask 191616   ;;  %vm1577_vm7 = vcmask 257216   ;;  %vm1355_vm8 = vcmask 57344  }
 0x20b   : > { %s3320_s29 = smov 24   ;;  %s2259_s4 = sshll.u32 %s4262_s26, 4 }
 0x20c   : > { %s812_s3 = scalar_lea.vmem [#allocation34], %s3869_s28  ;;  %s2258_s22 = sshll.u32 %s4262_s26, 7 }
 0x20d   : > { %2311 = vmatpush3.bf16.msra.mxu0 %v2639_v2  ;;  %s1920_s25 = sshll.u32 %s812_s3, 4  ;;  %s1895_s6 = scalar_lea.sflag [#allocation35], %s3869_s28  ;;  %s4108_s25 = int_to_ptr.vmem [resolvable:$true] %s1920_s25 }
 0x20e   : > { %2316 = vmatprep.subr.bf16.mxu0 %v3313_v0  ;;  %s3162_s7 = scalar_lea.vmem %s4108_s25, 16  ;;  %p4281_p8 = scmp.ne.s32.totalorder %s4255_s19, 0 }
 0x20f   : > { %p3163_p11 = scmp.ne.s32.totalorder %s4108_s25, %s3162_s7 }
 0x210   : > { %2313 = vmatmul.mubr.msk.bf16.vlgmr.msra.gmra.mrb[0].mxu0 %vm839_vm1, %v815_v5 }
 0x211   : > { %2317 = vmatpush3.bf16.msra.mxu0 %v2640_v4  ;;  %2320 = vmatprep.mubr.msk.bf16.mxu0 %vm3314_vm0, %v3313_v0  ;;  %p3164_p5 = pnand %p3163_p11, %p4281_p8 }
 0x212   : > { %2318 = vmatprep.subr.bf16.mxu0 %v3313_v0 }
 0x213   : > { %p3165_p7 = pneg %p3164_p5 }
 0x215   : > { %2319 = vmatpush3.bf16.msra.mxu0 %v2641_v6 }
 0x216   : > { %2324 = vmatprep.subr.bf16.mxu0 %v3313_v0 }
 0x218   : > { %2321 = vmatmul.mubr.msk.bf16.vlgmr.msra.gmra.mrb[4].mxu0 %vm839_vm1, %v815_v5 }
 0x219   : > { %2328 = vmatprep.mubr.msk.bf16.mxu0 %vm3314_vm0, %v3313_v0  ;;  %2325 = vmatpush3.bf16.msra.mxu0 %v2642_v7 }
 0x21a   : > { %2326 = vmatprep.subr.bf16.mxu0 %v3313_v0 }
 0x21d   : > { %2327 = vmatpush3.bf16.msra.mxu0 %v2643_v8 }
 0x21e   : > { %2338 = vmatprep.subr.bf16.mxu0 %v3313_v0 }
 0x220   : > { %2329 = vmatmul.mubr.msk.bf16.vlgmr.msra.gmra.mrb[8].mxu0 %vm839_vm1, %v815_v5 }
 0x221   : > { %2340 = vmatprep.mubr.msk.bf16.mxu0 %vm3314_vm0, %v3313_v0 }
 0x2e3   : > { %v877_v10 = vpop.f32.mrb[0].mxu0 }
 0x2e4   : > { %v878_v11 = vadd.f32 %v2210_v9, %v877_v10  ;;  %v2314_v12 = vpop.f32.mrb[1].mxu0 }
 0x2e5   : > { %v880_v13 = vpop.f32.mrb[2].mxu0 }
 0x2e6   : > { %v883_v14 = vmul.f32 0.35355338, %v878_v11  ;;  %v2315_v15 = vpop.f32.mrb[3].mxu0 }
 0x2e8   : > { %v1010_v16 = vpack.c.bf16 %v883_v14, %v883_v14 }
 0x2ea   : > { %1012 = vst.msk [vmem:[#allocation2] sm:$0xf] %vm1011_vm2, %v1010_v16  ;;  %1020 = vrot.lane.b32.xlu1 %v1010_v16, %s3315_s18 }
 0x2eb   : > { %v941_v18 = vpop.f32.mrb[4].mxu0 }
 0x2ec   : > { %v942_v19 = vadd.f32 %v2214_v17, %v941_v18  ;;  %v2322_v20 = vpop.f32.mrb[5].mxu0 }
 0x2ed   : > { %v944_v21 = vpop.f32.mrb[6].mxu0 }
 0x2ee   : > { %v1013_v22 = vpack.c.bf16 %v942_v19, %v942_v19  ;;  %v2323_v23 = vpop.f32.mrb[7].mxu0 }
 0x2f0   : > { %1014 = vst.msk [vmem:[#allocation3] sm:$0xf] %vm1011_vm2, %v1013_v22  ;;  %1061 = vrot.lane.b32.xlu1 %v1013_v22, %s3316_s30  ;;  %1028 = vrot.lane.b32.xlu0 %v1013_v22, %s3315_s18 }
 0x2f1   : > { %v1071_v26 = vld [vmem:[#allocation2] sm:$0xf] }
 0x2f3   : > { %v1004_v29 = vpop.f32.mrb[8].mxu0 }
 0x2f4   : > { %1056 = vrot.lane.b32.xlu1 %v1010_v16, %s3316_s30  ;;  %1046 = vrot.lane.b32.xlu0 %v1013_v22, %s3317_s17  ;;  %v1005_v30 = vadd.f32 %v2218_v27, %v1004_v29  ;;  %v2330_v31 = vpop.f32.mrb[9].mxu0 }
 0x2f5   : > { %v1007_v32 = vpop.f32.mrb[10].mxu0 }
 0x2f6   : > { %v3950_v33 = vpack.c.bf16 %v1005_v30, %v1005_v30  ;;  %v2331_v34 = vpop.f32.mrb[11].mxu0 }
 0x2f7   : > { %v1075_v24 = vld [vmem:[#allocation3] sm:$0xf] }
 0x2f8   : > { %1041 = vrot.lane.b32.xlu0 %v1010_v16, %s3317_s17  ;;  %v1088_v25 = vsel %vm1083_vm3, %v1075_v24, 0  ;;  %1016 = vst.msk [vmem:[#allocation4] sm:$0xf] %vm1011_vm2, %v3950_v33  ;;  %1036 = vrot.lane.b32.xlu1 %v3950_v33, %s3315_s18  ;;  %s4100_s18 = scalar_lea.vmem [#allocation33], %s2192_s21  ;;  %s4280_s21 = sld [smem:[#allocation61_spill]] }
 0x2f9   : > { %2333 = vmatpush3.bf16.xpose.msra.mxu1 %v1088_v25 }
 0x2fa   : > { %2344 = vmatprep.subr.bf16.mxu1 %v3313_v0 }
 0x2fe   : > { %s4113_s5 = scalar_lea.hbm %s4280_s21, %s2258_s22 }
 0x2ff   : > { %v1079_v46 = vld [vmem:[#allocation4] sm:$0xf] }
 0x300   : > { %2335 = vmatmul.mubr.msk.bf16.vlgmr.msra.gmra.mrb[0].mxu1 %vm1083_vm3, %v1071_v26  ;;  %v1366_v48 = vsel %vm1364_vm4, %v1079_v46, 0 }
 0x301   : > { %2346 = vmatprep.mubr.msk.bf16.mxu1 %vm3314_vm0, %v3313_v0 }
 0x35c   : > { %v1021_v28 = vpop.permute.xlu1 %1020 }
 0x35d   : > { %1024 = vst.msk [vmem:[#allocation2 + $0x4] sm:$0xf] %vm1011_vm2, %v1021_v28 }
 0x362   : > { %v1062_v35 = vpop.permute.xlu1 %1061  ;;  %v1029_v36 = vpop.permute.xlu0 %1028 }
 0x363   : > { %1065 = vst.msk [vmem:[#allocation3 + $0xc] sm:$0xf] %vm1011_vm2, %v1062_v35  ;;  %1032 = vst.msk [vmem:[#allocation3 + $0x4] sm:$0xf] %vm1011_vm2, %v1029_v36 }
 0x364   : > { %v1072_v45 = vld [vmem:[#allocation2 + $0x4] sm:$0xf] }
 0x366   : > { %v1057_v37 = vpop.permute.xlu1 %1056  ;;  %v1047_v38 = vpop.permute.xlu0 %1046 }
 0x367   : > { %1060 = vst.msk [vmem:[#allocation2 + $0xc] sm:$0xf] %vm1011_vm2, %v1057_v37  ;;  %1050 = vst.msk [vmem:[#allocation3 + $0x8] sm:$0xf] %vm1011_vm2, %v1047_v38 }
 0x36a   : > { %v1042_v39 = vpop.permute.xlu0 %1041  ;;  %v1076_v40 = vld [vmem:[#allocation3 + $0x4] sm:$0xf]  ;;  %v1078_v44 = vld [vmem:[#allocation3 + $0xc] sm:$0xf]  ;;  %v1037_v56 = vpop.permute.xlu1 %1036 }
 0x36b   : > { %1045 = vst.msk [vmem:[#allocation2 + $0x8] sm:$0xf] %vm1011_vm2, %v1042_v39  ;;  %v1134_v41 = vsel %vm1083_vm3, %v1076_v40, 0  ;;  %v1226_v47 = vsel %vm1083_vm3, %v1078_v44, 0  ;;  %1040 = vst.msk [vmem:[#allocation4 + $0x4] sm:$0xf] %vm1011_vm2, %v1037_v56 }
 0x36c   : > { %2339 = vmatpush3.bf16.xpose.msra.mxu0 %v1134_v41 }
 0x36d   : > { %2350 = vmatprep.subr.bf16.mxu0 %v3313_v0 }
 0x36e   : > { %v1077_v42 = vld [vmem:[#allocation3 + $0x8] sm:$0xf]  ;;  %v1074_v50 = vld [vmem:[#allocation2 + $0xc] sm:$0xf] }
 0x36f   : > { %v1180_v43 = vsel %vm1083_vm3, %v1077_v42, 0 }
 0x370   : > { %2345 = vmatpush3.bf16.xpose.msra.mxu1 %v1180_v43 }
 0x371   : > { %2356 = vmatprep.subr.bf16.mxu1 %v3313_v0 }
 0x372   : > { %v1073_v49 = vld [vmem:[#allocation2 + $0x8] sm:$0xf]  ;;  %v1080_v57 = vld [vmem:[#allocation4 + $0x4] sm:$0xf] }
 0x373   : > { %2341 = vmatmul.mubr.msk.bf16.vlgmr.msra.gmra.mrb[12].mxu0 %vm1083_vm3, %v1072_v45  ;;  %v1412_v58 = vsel %vm1364_vm4, %v1080_v57, 0 }
 0x374   : > { %2351 = vmatpush3.bf16.xpose.msra.mxu0 %v1226_v47  ;;  %2352 = vmatprep.mubr.msk.bf16.mxu0 %vm3314_vm0, %v3313_v0 }
 0x375   : > { %2362 = vmatprep.subr.bf16.mxu0 %v3313_v0 }
 0x377   : > { %2347 = vmatmul.mubr.msk.bf16.vlgmr.msra.gmra.mrb[4].mxu1 %vm1083_vm3, %v1073_v49 }
 0x378   : > { %2357 = vmatpush3.bf16.msra.mxu1 %v1366_v48  ;;  %2358 = vmatprep.mubr.msk.bf16.mxu1 %vm3314_vm0, %v3313_v0 }
 0x379   : > { %2368 = vmatprep.subr.bf16.mxu1 %v3313_v0 }
 0x37b   : > { %2353 = vmatmul.mubr.msk.bf16.vlgmr.msra.gmra.mrb[16].mxu0 %vm1083_vm3, %v1074_v50 }
 0x37c   : > { %2364 = vmatprep.mubr.msk.bf16.mxu0 %vm3314_vm0, %v3313_v0  ;;  %2363 = vmatpush3.bf16.msra.mxu0 %v1412_v58 }
 0x37d   : > { %2374 = vmatprep.subr.bf16.mxu0 %v3313_v0 }
 0x3d3   : > { %v1124_v51 = vpop.f32.mrb[0].mxu1 }
 0x3d4   : > { %v2336_v52 = vpop.f32.mrb[1].mxu1  ;;  %v1268_v53 = vsel %vm1083_vm3, %v1124_v51, -inf }
 0x3d5   : > { %1269 = vmax.xlane.f32.xlu0 %v1268_v53  ;;  %v1127_v54 = vpop.f32.mrb[2].mxu1 }
 0x3d6   : > { %v2337_v55 = vpop.f32.mrb[3].mxu1 }
 0x446   : > { %v1170_v59 = vpop.f32.mrb[12].mxu0 }
 0x447   : > { %v2342_v60 = vpop.f32.mrb[13].mxu0  ;;  %v1271_v61 = vsel %vm1083_vm3, %v1170_v59, -inf }
 0x448   : > { %1272 = vmax.xlane.f32.xlu1 %v1271_v61  ;;  %v1173_v62 = vpop.f32.mrb[14].mxu0 }
 0x449   : > { %v2343_v63 = vpop.f32.mrb[15].mxu0 }
 0x44a   : > { %v1216_v1 = vpop.f32.mrb[4].mxu1 }
 0x44b   : > { %v2348_v2 = vpop.f32.mrb[5].mxu1  ;;  %v1274_v4 = vsel %vm1083_vm3, %v1216_v1, -inf }
 0x44c   : > { %1275 = vmax.xlane.f32.xlu0 %v1274_v4  ;;  %v1219_v5 = vpop.f32.mrb[6].mxu1  ;;  %v2645_v2 = vld [vmem:[#allocation14 + $0x8] sm:$0xff]  }
 0x44d   : > { %v2349_v6 = vpop.f32.mrb[7].mxu1 }
 0x44e   : > { %v1262_v7 = vpop.f32.mrb[16].mxu0 }
 0x44f   : > { %v2354_v8 = vpop.f32.mrb[17].mxu0  ;;  %v1277_v9 = vsel %vm1083_vm3, %v1262_v7, -inf }
 0x450   : > { %1278 = vmax.xlane.f32.xlu0 %v1277_v9  ;;  %v1265_v10 = vpop.f32.mrb[18].mxu0 }
 0x451   : > { %v2355_v11 = vpop.f32.mrb[19].mxu0 }
 0x459   : > { %1066 = vrot.lane.b32.xlu1 %v3950_v33, %s3316_s30  ;;  %s1907_s30 = sshll.u32 %s4100_s18, 4  ;;  %s4115_s30 = int_to_ptr.vmem [resolvable:$true] %s1907_s30 }
 0x462   : > { %v3987_v12 = vpop.xlane.xlu0 %1269 }
 0x463   : > { %v1280_v13 = vsub.f32 %v1124_v51, %v3987_v12 }
 0x465   : > { %v1284_v14 = vmul.f32 1.442695, %v1280_v13 }
 0x466   : > { %1051 = vrot.lane.b32.xlu0 %v3950_v33, %s3317_s17 }
 0x467   : > { %2656 = vpow2.f32 %v1284_v14 }
 0x471   : > { %v2657_v15 = vpop.eup %2656 }
 0x472   : > { %v1357_v16 = vpack.c.bf16 %v2657_v15, %v2657_v15  ;;  %v3992_v17 = vmul.f32 %v2657_v15, %v1124_v51  ;;  %v1292_v36 = vsel %vm1083_vm3, %v2657_v15, 0.0 }
 0x474   : > { %2359 = vmatmul.mubr.msk.bf16.vlgmr.msra.gmra.mrb[8].mxu1 %vm1083_vm3, %v1357_v16 }
 0x475   : > { %2370 = vmatprep.mubr.msk.bf16.mxu1 %vm3314_vm0, %v3313_v0 }
 0x4d5   : > { %v3997_v18 = vpop.xlane.xlu1 %1272 }
 0x4d6   : > { %v1281_v19 = vsub.f32 %v1170_v59, %v3997_v18 }
 0x4d8   : > { %v1286_v20 = vmul.f32 1.442695, %v1281_v19 }
 0x4d9   : > { %v4000_v21 = vpop.xlane.xlu0 %1275  ;;  %v1067_v22 = vpop.permute.xlu1 %1066 }
 0x4da   : > { %2658 = vpow2.f32 %v1286_v20  ;;  %v1282_v23 = vsub.f32 %v1216_v1, %v4000_v21  ;;  %1070 = vst.msk [vmem:[#allocation4 + $0xc] sm:$0xf] %vm1011_vm2, %v1067_v22 }
 0x4dc   : > { %v1288_v24 = vmul.f32 1.442695, %v1282_v23 }
 0x4dd   : > { %v4004_v25 = vpop.xlane.xlu0 %1278 }
 0x4de   : > { %2660 = vpow2.f32 %v1288_v24  ;;  %v1283_v26 = vsub.f32 %v1262_v7, %v4004_v25 }
 0x4e0   : > { %v1290_v27 = vmul.f32 1.442695, %v1283_v26 }
 0x4e1   : > { %v1052_v28 = vpop.permute.xlu0 %1051  ;;  %v1082_v30 = vld [vmem:[#allocation4 + $0xc] sm:$0xf] }
 0x4e2   : > { %2662 = vpow2.f32 %v1290_v27  ;;  %1055 = vst.msk [vmem:[#allocation4 + $0x8] sm:$0xf] %vm1011_vm2, %v1052_v28  ;;  %v1504_v34 = vsel %vm1364_vm4, %v1082_v30, 0  ;;  %v2236_v27 = vld [vmem:[#allocation20] ss:$0 sm:$0xff] }
 0x4e4   : > { %v2659_v29 = vpop.eup %2658 }
 0x4e5   : > { %v1295_v31 = vsel %vm1083_vm3, %v2659_v29, 0.0  ;;  %v1358_v32 = vpack.c.bf16 %v2659_v29, %v2659_v29  ;;  %v4009_v33 = vmul.f32 %v2659_v29, %v1170_v59 }
 0x4e6   : > { %1296 = vadd.xlane.f32.xlu1 %v1295_v31 }
 0x4e7   : > { %2365 = vmatmul.mubr.msk.bf16.vlgmr.msra.gmra.mrb[20].mxu0 %vm1083_vm3, %v1358_v32 }
 0x4e8   : > { %v2661_v35 = vpop.eup %2660  ;;  %2375 = vmatpush3.bf16.msra.mxu0 %v1504_v34  ;;  %2376 = vmatprep.mubr.msk.bf16.mxu0 %vm3314_vm0, %v3313_v0 }
 0x4e9   : > { %v1298_v37 = vsel %vm1083_vm3, %v2661_v35, 0.0  ;;  %v1081_v38 = vld [vmem:[#allocation4 + $0x8] sm:$0xf]  ;;  %v4017_v39 = vmul.f32 %v2661_v35, %v1216_v1  ;;  %2388 = vmatprep.subr.bf16.mxu0 %v3313_v0  ;;  %v1359_v42 = vpack.c.bf16 %v2661_v35, %v2661_v35  ;;  %v2644_v1 = vld [vmem:[#allocation14] sm:$0xff]  }
 0x4ea   : > { %1293 = vadd.xlane.f32.xlu1 %v1292_v36  ;;  %1299 = vadd.xlane.f32.xlu0 %v1298_v37  ;;  %v1458_v40 = vsel %vm1364_vm4, %v1081_v38, 0 }
 0x4eb   : > { %2369 = vmatpush3.bf16.msra.mxu1 %v1458_v40 }
 0x4ec   : > { %v2663_v41 = vpop.eup %2662  ;;  %2380 = vmatprep.subr.bf16.mxu1 %v3313_v0 }
 0x4ed   : > { %v1301_v43 = vsel %vm1083_vm3, %v2663_v41, 0.0  ;;  %v1360_v44 = vpack.c.bf16 %v2663_v41, %v2663_v41  ;;  %v4023_v45 = vmul.f32 %v2663_v41, %v1262_v7 }
 0x4ee   : > { %1302 = vadd.xlane.f32.xlu0 %v1301_v43  ;;  %2371 = vmatmul.mubr.msk.bf16.vlgmr.msra.gmra.mrb[12].mxu1 %vm1083_vm3, %v1359_v42  ;;  %v1308_v42 = vsel %vm1083_vm3, %v3992_v17, 0.0  ;;  %v1314_v43 = vsel %vm1083_vm3, %v4017_v39, 0.0  ;;  %v2651_v17 = vld [vmem:[#allocation27 + $0x18] sm:$0xff]   ;;  %v2652_v39 = vld [vmem:[#allocation27 + $0x20] sm:$0xff]  }
 0x4ef   : > { %2377 = vmatmul.mubr.msk.bf16.vlgmr.msra.gmra.mrb[24].mxu0 %vm1083_vm3, %v1360_v44  ;;  %2384 = vmatprep.mubr.msk.bf16.mxu1 %vm3314_vm0, %v3313_v0  ;;  %v2646_v44 = vld [vmem:[#allocation24] sm:$0xff]  }
 0x4f0   : > { %2392 = vmatprep.mubr.msk.bf16.mxu0 %vm3314_vm0, %v3313_v0  ;;  %2381 = vmatpush3.bf16.msra.mxu1 %v2644_v1 }
 0x4f1   : > { %2382 = vmatprep.subr.bf16.mxu1 %v3313_v0  ;;  %2389 = vmatpush3.bf16.msra.mxu0 %v2646_v44 }
 0x4f2   : > { %2390 = vmatprep.subr.bf16.mxu0 %v3313_v0 }
 0x4f4   : > { %2383 = vmatpush3.bf16.msra.mxu1 %v2645_v2 }
 0x4f5   : > { %2396 = vmatprep.subr.bf16.mxu1 %v3313_v0 }
 0x547   : > { %v1402_v46 = vpop.f32.mrb[8].mxu1 }
 0x548   : > { %v2360_v47 = vpop.f32.mrb[9].mxu1 }
 0x549   : > { %v1405_v48 = vpop.f32.mrb[10].mxu1  ;;  %v2649_v47 = vld [vmem:[#allocation27 + $0x8] sm:$0xff]  }
 0x54a   : > { %v2361_v49 = vpop.f32.mrb[11].mxu1  ;;  %v2650_v48 = vld [vmem:[#allocation27 + $0x10] sm:$0xff]  }
 0x54b   : > { %v2653_v49 = vld [vmem:[#allocation27 + $0x28] sm:$0xff]  }
 0x573   : > { %v4031_v50 = vpop.xlane.xlu1 %1296 }
 0x577   : > { %v4033_v51 = vpop.xlane.xlu1 %1293  ;;  %v4041_v55 = vpop.xlane.xlu0 %1299 }
 0x578   : > { %2664 = vrcp.f32 %v4033_v51 }
 0x579   : > { %2666 = vrcp.f32 %v4031_v50 }
 0x57a   : > { %2668 = vrcp.f32 %v4041_v55 }
 0x57b   : > { %v4043_v56 = vpop.xlane.xlu0 %1302 }
 0x57c   : > { %2670 = vrcp.f32 %v4043_v56 }
 0x582   : > { %v4036_v52 = vpop.eup %2664 }
 0x583   : > { %v1546_v53 = vmul.f32 %v4036_v52, %v1402_v46  ;;  %v4047_v57 = vpop.eup %2666  ;;  %v2648_v46 = vld [vmem:[#allocation27] sm:$0xff]  }
 0x584   : > { %v4051_v4 = vpop.eup %2668 }
 0x585   : > { %v1550_v54 = vpack.c.bf16 %v1546_v53, %v1546_v53 }
 0x586   : > { %v4054_v9 = vpop.eup %2670 }
 0x587   : > { %1551 = vst.msk [vmem:[#allocation5] sm:$0xf] %vm1011_vm2, %v1550_v54 }
 0x5ba   : > { %v1448_v58 = vpop.f32.mrb[20].mxu0 }
 0x5bb   : > { %v1547_v59 = vmul.f32 %v4047_v57, %v1448_v58  ;;  %v2366_v60 = vpop.f32.mrb[21].mxu0 }
 0x5bc   : > { %v1451_v61 = vpop.f32.mrb[22].mxu0  ;;  %v2240_v60 = vld [vmem:[#allocation21] ss:$0 sm:$0xff] }
 0x5bd   : > { %v2265_v62 = vpack.c.bf16 %v1547_v59, %v1547_v59  ;;  %v2367_v63 = vpop.f32.mrb[23].mxu0 }
 0x5bf   : > { %1556 = vrot.lane.b32.xlu0 %v2265_v62, %s3318_s1  ;;  %v2241_v62 = vld [vmem:[#allocation23] ss:$0 sm:$0xff] }
 0x5c1   : > { %v1494_v5 = vpop.f32.mrb[12].mxu1 }
 0x5c2   : > { %v1548_v6 = vmul.f32 %v4051_v4, %v1494_v5  ;;  %v2372_v7 = vpop.f32.mrb[13].mxu1  ;;  %v1540_v8 = vpop.f32.mrb[24].mxu0  ;;  %v2654_v5 = vld [vmem:[#allocation27 + $0x30] sm:$0xff]  }
 0x5c3   : > { %v1497_v10 = vpop.f32.mrb[14].mxu1  ;;  %v2378_v11 = vpop.f32.mrb[25].mxu0  ;;  %v1549_v14 = vmul.f32 %v4054_v9, %v1540_v8  ;;  %v2242_v7 = vld [vmem:[#allocation26] ss:$0 sm:$0xff] }
 0x5c4   : > { %v2266_v13 = vpack.c.bf16 %v1548_v6, %v1548_v6  ;;  %v2373_v15 = vpop.f32.mrb[15].mxu1  ;;  %v1543_v16 = vpop.f32.mrb[26].mxu0  ;;  %v2655_v6 = vld [vmem:[#allocation27 + $0x38] sm:$0xff]  }
 0x5c5   : > { %v2379_v19 = vpop.f32.mrb[27].mxu0  ;;  %v2267_v20 = vpack.c.bf16 %v1549_v14, %v1549_v14 }
 0x5c6   : > { %1565 = vrot.lane.b32.xlu1 %v2266_v13, %s3319_s23  ;;  %s4279_s23 = sld [smem:[#allocation62_spill]] }
 0x5ca   : > { %1574 = vrot.lane.b32.xlu1 %v2267_v20, %s3320_s29  ;;  %v2254_v20 = vld [vmem:[#allocation29] ss:$0 sm:$0xff] }
 0x5cc   : > { %s4106_s29 = scalar_lea.hbm %s4279_s23, %s2259_s4  ;;  %s3321_s4 = smov [#allocation34]  }
 0x5cd   : > { %s3166_s17 = sshll.u32 %s3321_s4, 4  ;;  %s3167_s17 = int_to_ptr.vmem [resolvable:$false] %s3166_s17 }
 0x5ce   : > { %s3168_s1 = scalar_lea.vmem %s3167_s17, 32  ;;  %p3169_p6 = scmp.lt.s32.totalorder %s4108_s25, %s3167_s17 }
 0x5cf   : > { %p3170_p9 = scmp.lt.s32.totalorder %s3168_s1, %s3162_s7 }
 0x5d1   : > { %p3171_p12 = por %p3170_p9, %p3169_p6 }
 0x5d3   : > { %p3172_p13 = pnand %p3171_p12, %p3165_p7 }
 0x631   : > { %v1557_v22 = vpop.permute.xlu0 %1556 }
 0x632   : > { %1560 = vst.msk [vmem:[#allocation5] sm:$0xf] %vm1559_vm5, %v1557_v22 }
 0x638   : > { %v1566_v23 = vpop.permute.xlu1 %1565 }
 0x639   : > { %1569 = vst.msk [vmem:[#allocation5] sm:$0xf] %vm1568_vm6, %v1566_v23 }
 0x63c   : > { %v1575_v24 = vpop.permute.xlu1 %1574 }
 0x63d   : > { %1578 = vst.msk [vmem:[#allocation5] sm:$0xf] %vm1577_vm7, %v1575_v24 }
 0x644   : > { %v1579_v26 = vld [vmem:[#allocation5] sm:$0xf] }
 0x645   : > { %2385 = vmatmul.mubr.msk.bf16.vlgmr.msra.gmra.mrb[16].mxu1 %vm839_vm1, %v1579_v26 }
 0x646   : > { %2412 = vmatprep.mubr.msk.bf16.mxu1 %vm3314_vm0, %v3313_v0  ;;  %2397 = vmatpush3.bf16.msra.mxu1 %v2648_v46 }
 0x647   : > { %2398 = vmatprep.subr.bf16.mxu1 %v3313_v0 }
 0x64a   : > { %2399 = vmatpush3.bf16.msra.mxu1 %v2649_v47 }
 0x64b   : > { %2400 = vmatprep.subr.bf16.mxu1 %v3313_v0 }
 0x64e   : > { %2401 = vmatpush3.bf16.msra.mxu1 %v2650_v48 }
 0x64f   : > { %2402 = vmatprep.subr.bf16.mxu1 %v3313_v0 }
 0x652   : > { %2403 = vmatpush3.bf16.msra.mxu1 %v2651_v17 }
 0x653   : > { %2404 = vmatprep.subr.bf16.mxu1 %v3313_v0 }
 0x656   : > { %2405 = vmatpush3.bf16.msra.mxu1 %v2652_v39 }
 0x657   : > { %2406 = vmatprep.subr.bf16.mxu1 %v3313_v0 }
 0x65a   : > { %2407 = vmatpush3.bf16.msra.mxu1 %v2653_v49 }
 0x65b   : > { %2408 = vmatprep.subr.bf16.mxu1 %v3313_v0 }
 0x65e   : > { %2409 = vmatpush3.bf16.msra.mxu1 %v2654_v5 }
 0x65f   : > { %2410 = vmatprep.subr.bf16.mxu1 %v3313_v0 }
 0x662   : > { %2411 = vmatpush3.bf16.msra.mxu1 %v2655_v6 }
 0x718   : > { %v1640_v28 = vpop.f32.mrb[16].mxu1 }
 0x719   : > { %v1641_v29 = vadd.f32 %v2236_v27, %v1640_v28  ;;  %v2386_v30 = vpop.f32.mrb[17].mxu1 }
 0x71a   : > { %v1643_v31 = vpop.f32.mrb[18].mxu1 }
 0x71b   : > { %v2387_v32 = vpop.f32.mrb[19].mxu1  ;;  %v1646_v34 = vadd.f32 %v1641_v29, %v3917_v3  ;;  %v2647_v3 = vld [vmem:[#allocation24 + $0x8] sm:$0xff]  }
 0x71c   : > { %2391 = vmatpush3.bf16.msra.mxu0 %v2647_v3 }
 0x71d   : > { %v1649_v35 = vsel %vm839_vm1, %v1646_v34, 0.0 }
 0x71e   : > { %1650 = vadd.xlane.f32.xlu0 %v1649_v35  ;;  %v1317_v35 = vsel %vm1083_vm3, %v4023_v45, 0.0 }
 0x7ab   : > { %v1651_v36 = vpop.xlane.xlu0 %1650 }
 0x7ac   : > { %v1653_v37 = vmul.f32 0.03125, %v1651_v36 }
 0x7ae   : > { %v1654_v38 = vsub.f32 %v1646_v34, %v1653_v37  ;;  %v1311_v34 = vsel %vm1083_vm3, %v4009_v33, 0.0 }
 0x7b0   : > { %v1655_v40 = vmul.f32 %v1654_v38, %v1654_v38 }
 0x7b2   : > { %v1656_v41 = vsel %vm839_vm1, %v1655_v40, 0.0 }
 0x7b3   : > { %1657 = vadd.xlane.f32.xlu1 %v1656_v41 }
 0x7b7   : > { %1309 = vadd.xlane.f32.xlu1 %v1308_v42 }
 0x7bb   : > { %1315 = vadd.xlane.f32.xlu1 %v1314_v43 }
 0x840   : > { %v1658_v53 = vpop.xlane.xlu1 %1657 }
 0x841   : > { %v1659_v54 = vmul.f32 0.03125, %v1658_v53 }
 0x843   : > { %v1660_v58 = vadd.f32 1e-05, %v1659_v54 }
 0x844   : > { %v1310_v37 = vpop.xlane.xlu1 %1309 }
 0x845   : > { %2672 = vrsqrt.f32 %v1660_v58 }
 0x846   : > { %2674 = vlog2.f32 %v4031_v50 }
 0x847   : > { %2676 = vlog2.f32 %v4033_v51 }
 0x848   : > { %2678 = vlog2.f32 %v4041_v55  ;;  %v1316_v47 = vpop.xlane.xlu1 %1315  ;;  %v1348_v55 = vlaneseq }
 0x849   : > { %2680 = vlog2.f32 %v4043_v56  ;;  %v1336_v56 = vmul.f32 %v4036_v52, %v1310_v37  ;;  %v1338_v48 = vmul.f32 %v4051_v4, %v1316_v47 }
 0x84f   : > { %v2673_v59 = vpop.eup %2672 }
 0x850   : > { %v1662_v61 = vmul.f32 %v2673_v59, %v1654_v38  ;;  %v2675_v36 = vpop.eup %2674  ;;  %v1349_v59 = vand.u32 127, %v1348_v55 }
 0x851   : > { %v2677_v38 = vpop.eup %2676  ;;  %v1327_v43 = vmul.f32 0.6931472, %v2675_v36 }
 0x852   : > { %v1669_v63 = vmul.f32 %v2240_v60, %v1662_v61  ;;  %v2679_v40 = vpop.eup %2678  ;;  %v1325_v3 = vmul.f32 0.6931472, %v2677_v38 }
 0x853   : > { %v2681_v42 = vpop.eup %2680  ;;  %v1329_v45 = vmul.f32 0.6931472, %v2679_v40  ;;  %v1333_v17 = vadd.f32 %v1327_v43, %v3997_v18 }
 0x854   : > { %v1676_v1 = vadd.f32 %v2241_v62, %v1669_v63  ;;  %v1331_v46 = vmul.f32 0.6931472, %v2681_v42  ;;  %v1332_v39 = vadd.f32 %v1325_v3, %v3987_v12 }
 0x855   : > { %v1334_v49 = vadd.f32 %v1329_v45, %v4000_v21  ;;  %v2255_v21 = vld [vmem:[#allocation30] ss:$0 sm:$0xff] }
 0x856   : > { %v1677_v2 = vpack.c.bf16 %v1676_v1, %v1676_v1  ;;  %v1335_v53 = vadd.f32 %v1331_v46, %v4004_v25  ;;  %v1340_v60 = vsub.f32 %v1332_v39, %v1336_v56 }
 0x857   : > { %v1342_v4 = vsub.f32 %v1334_v49, %v1338_v48 }
 0x858   : > { %2393 = vmatmul.mubr.msk.bf16.vlgmr.msra.gmra.mrb[28].mxu0 %vm839_vm1, %v1677_v2  ;;  %v2256_v2 = vld [vmem:[#allocation32] ss:$0 sm:$0xff] }
 0x92b   : > { %v1738_v8 = vpop.f32.mrb[28].mxu0 }
 0x92c   : > { %v1739_v10 = vadd.f32 %v2242_v7, %v1738_v8  ;;  %v2394_v11 = vpop.f32.mrb[29].mxu0 }
 0x92d   : > { %v1741_v13 = vpop.f32.mrb[30].mxu0 }
 0x92e   : > { %v1744_v14 = vmax.f32 %v1739_v10, 0.0  ;;  %v2395_v15 = vpop.f32.mrb[31].mxu0 }
 0x930   : > { %v1745_v16 = vpack.c.bf16 %v1744_v14, %v1744_v14 }
 0x932   : > { %2413 = vmatmul.mubr.bf16.vlgmr.msra.gmra.mrb[20].mxu1 %v1745_v16 }
 0xa05   : > { %v1844_v19 = vpop.f32.mrb[20].mxu1 }
 0xa06   : > { %v1850_v22 = vadd.f32 %v1844_v19, %v1676_v1  ;;  %v2414_v23 = vpop.f32.mrb[21].mxu1 }
 0xa07   : > { %v1847_v24 = vpop.f32.mrb[22].mxu1 }
 0xa08   : > { %v2415_v26 = vpop.f32.mrb[23].mxu1  ;;  %v1858_v27 = vadd.f32 %v2254_v20, %v1850_v22 }
 0xa0a   : > { %v1861_v0 = vsel %vm839_vm1, %v1858_v27, 0.0 }
 0xa0b   : > { %1862 = vadd.xlane.f32.xlu0 %v1861_v0 }
 0xa98   : > { %v1863_v28 = vpop.xlane.xlu0 %1862 }
 0xa99   : > { %v1864_v29 = vmul.f32 0.03125, %v1863_v28 }
 0xa9b   : > { %v1865_v30 = vsub.f32 %v1858_v27, %v1864_v29 }
 0xa9d   : > { %v1866_v31 = vmul.f32 %v1865_v30, %v1865_v30 }
 0xa9f   : > { %v1867_v32 = vsel %vm839_vm1, %v1866_v31, 0.0 }
 0xaa0   : > { %1868 = vadd.xlane.f32.xlu0 %v1867_v32 }
 0xaa4   : > { %1312 = vadd.xlane.f32.xlu0 %v1311_v34 }
 0xaa8   : > { %1318 = vadd.xlane.f32.xlu0 %v1317_v35 }
 0xb2d   : > { %v1869_v41 = vpop.xlane.xlu0 %1868 }
 0xb2e   : > { %v1870_v33 = vmul.f32 0.03125, %v1869_v41 }
 0xb30   : > { %v1871_v44 = vadd.f32 1e-05, %v1870_v33 }
 0xb31   : > { %v1313_v50 = vpop.xlane.xlu0 %1312 }
 0xb32   : > { %2682 = vrsqrt.f32 %v1871_v44  ;;  %v1337_v51 = vmul.f32 %v4047_v57, %v1313_v50  ;;  %v1351_v57 = vshrl.u32 %v1348_v55, 7 }
 0xb34   : > { %v1341_v58 = vsub.f32 %v1333_v17, %v1337_v51  ;;  %v1352_v18 = vsub.s32 %v1349_v59, %v1351_v57 }
 0xb35   : > { %v1319_v54 = vpop.xlane.xlu0 %1318 }
 0xb36   : > { %v1339_v52 = vmul.f32 %v4054_v9, %v1319_v54  ;;  %v1344_v62 = vmax.f32 %v1340_v60, %v1341_v58 }
 0xb38   : > { %v1343_v61 = vsub.f32 %v1335_v53, %v1339_v52 }
 0xb3a   : > { %v1345_v63 = vmax.f32 %v1342_v4, %v1343_v61 }
 0xb3c   : > { %v2683_v12 = vpop.eup %2682  ;;  %v1346_v25 = vmax.f32 %v1344_v62, %v1345_v63 }
 0xb3d   : > { %v1873_v1 = vmul.f32 %v2683_v12, %v1865_v30 }
 0xb3e   : > { %v1353_v9 = vrot.slane %v1346_v25, %v1352_v18 }
 0xb3f   : > { %v1880_v5 = vmul.f32 %v2255_v21, %v1873_v1 }
 0xb40   : > { %1356 = vst.msk [vmem:[%s812_s3] sm:$0x1] %vm1355_vm8, %v1353_v9 }
 0xb41   : > { %v1887_v6 = vadd.f32 %v2256_v2, %v1880_v5 }
 0xb42   : > { %3175 = shalt.err (!%p3172_p13)
}
 0xb43   : > { %s3176_s0 = scalar_lea.hbm %s4106_s29, 16  ;;  %s3180_s26 = scalar_lea.hbm %s4279_s23, 32 }
 0xb44   : > { %p3177_p1 = scmp.ne.s32.totalorder %s4106_s29, %s3176_s0  ;;  %p3181_p0 = scmp.lt.u32.totalorder %s4106_s29, %s4279_s23 }
 0xb45   : > { %p3182_p4 = scmp.lt.u32.totalorder %s3180_s26, %s3176_s0  ;;  %p3184_p11 = scmp.lt.u32.totalorder %s3176_s0, %s4106_s29 }
 0xb46   : > { %p3178_p3 = pnand %p3177_p1, %p4281_p8 }
 0xb47   : > { %p3183_p10 = por %p3182_p4, %p3181_p0 }
 0xb48   : > { %p3179_p2 = pneg %p3178_p3 }
 0xb49   : > { %p3185_p5 = por %p3184_p11, %p3183_p10 }
 0xb4b   : > { %p3186_p7 = pnand %p3185_p5, %p3179_p2 }
 0xb4d   : > { %3189 = shalt.err (!%p3186_p7)
}
 0xb4e   : > { %2483 = dma.vmem_to_hbm [thread:$0]  (%p4281_p8), %s4108_s25, 16, %s4106_s29, %s1895_s6   ;;  %1888 = vst.msk [vmem:[%s4100_s18] sm:$0xff] %vm839_vm1, %v1887_v6 }
 0xb4f   : > { %s1890_s7 = scalar_lea.sflag [#allocation8], %s3869_s28  ;;  %s3190_s1 = scalar_lea.vmem %s4115_s30, 128 }
 0xb50   : > { %p3191_p6 = scmp.ne.s32.totalorder %s4115_s30, %s3190_s1  ;;  %s3322_s0 = smov [#allocation33]  }
 0xb51   : > { %s3194_s3 = sshll.u32 %s3322_s0, 4  ;;  %s3195_s3 = int_to_ptr.vmem [resolvable:$false] %s3194_s3 }
 0xb52   : > { %p3192_p9 = pnand %p3191_p6, %p4281_p8  ;;  %s3196_s22 = scalar_lea.vmem %s3195_s3, 256 }
 0xb53   : > { %p3197_p13 = scmp.lt.s32.totalorder %s4115_s30, %s3195_s3  ;;  %p3198_p1 = scmp.lt.s32.totalorder %s3196_s22, %s3190_s1 }
 0xb54   : > { %p3193_p12 = pneg %p3192_p9 }
 0xb55   : > { %p3199_p3 = por %p3198_p1, %p3197_p13 }
 0xb57   : > { %p3200_p2 = pnand %p3199_p3, %p3193_p12 }
 0xb59   : > { %3203 = shalt.err (!%p3200_p2)
}
 0xb5a   : > { %s3204_s6 = scalar_lea.hbm %s4113_s5, 128  ;;  %s3208_s18 = scalar_lea.hbm %s4280_s21, 256 }
 0xb5b   : > { %p3205_p0 = scmp.ne.s32.totalorder %s4113_s5, %s3204_s6  ;;  %p3209_p11 = scmp.lt.u32.totalorder %s4113_s5, %s4280_s21 }
 0xb5c   : > { %p3210_p5 = scmp.lt.u32.totalorder %s3208_s18, %s3204_s6  ;;  %p3212_p6 = scmp.lt.u32.totalorder %s3204_s6, %s4113_s5 }
 0xb5d   : > { %p3206_p4 = pnand %p3205_p0, %p4281_p8 }
 0xb5e   : > { %p3211_p7 = por %p3210_p5, %p3209_p11 }
 0xb5f   : > { %p3207_p10 = pneg %p3206_p4 }
 0xb60   : > { %p3213_p9 = por %p3212_p6, %p3211_p7 }
 0xb62   : > { %p3214_p12 = pnand %p3213_p9, %p3207_p10 }
 0xb64   : > { %3217 = shalt.err (!%p3214_p12)
}
 0xb65   : > { %2482 = dma.vmem_to_hbm [thread:$0]  (%p4281_p8), %s4115_s30, 128, %s4113_s5, %s1890_s7  }
 0xb66 PF: > { %s4282_s4 = sld [smem:[#allocation47_spill]]  ;;  %s4283_s17 = sld [smem:[#allocation50_spill]] }
 0xb67   : > { %p4284_p13 = scmp.ne.s32.totalorder %s4256_s20, 0 }
 0xb6c   : > { %s1932_s1 = sand.u32 1, %s4282_s4   ;;  %p4285_p1 = scmp.ge.s32.totalorder %s4283_s17, 2 }
 0xb6d   : > { %s1933_s0 = scalar_lea.sflag [#allocation8], %s1932_s1 }
 0xb6e   : > { %p2540_p3 = pnand %p4285_p1, %p4284_p13 }
 0xb70   : > { %3271 = dma.done.wait (!%p2540_p3), %s1933_s0, 128  }
 0xb71   : > { %3273 = vsyncadd (!%p2540_p3), %s1933_s0, 4294967168  ;;  %s1942_s3 = scalar_lea.sflag [#allocation35], %s1932_s1 }
 0xb72   : > { %3275 = dma.done.wait (!%p2540_p3), %s1942_s3, 16  }
 0xb73   : > { %3277 = vsyncadd (!%p2540_p3), %s1942_s3, 4294967280  ;;  %s4286_s22 = sld [smem:[#allocation48_spill]]  ;;  %s4287_s28 = sld [smem:[#allocation49_spill]] }
 0xb74   : > { %s4288_s19 = smov %s3804_s27  ;;  %p43_p8 = scmp.ge.s32.totalorder %s3793_s2, 4  }
 0xb75   : > { %s4290_s29 = smov %s4288_s19  ;;  %s4291_s30 = smov %s3793_s2 }
 0xb76   :  { %45 = sbr.rel (!%p43_p8) target bundleno = 26 (0x1a), region = 223 }
 0xb79   : > { %s4289_s27 = smov %s4286_s22 }
 0xb7d   :  { %1946 = vsyncpa [#allocation7], 1 }
 0xb7e   :  { %1948 = vsyncpa [#allocation7 + $0x1], 1 }
 0xb7f   :  { %1949 = vsyncpa [#allocation10], 1 }
 0xb80   :  { %1950 = vsyncpa [#allocation13], 1 }
 0xb81   :  { %1951 = vsyncpa [#allocation16], 1 }
 0xb82   :  { %1952 = vsyncpa [#allocation19], 1 }
 0xb83   :  { %1953 = vsyncpa [#allocation22], 1 }
 0xb84   :  { %1954 = vsyncpa [#allocation25], 1 }
 0xb85   :  { %1955 = vsyncpa [#allocation28], 1 }
 0xb86   :  { %1956 = vsyncpa [#allocation31], 1 }
 0xb87   :  { %1957 = vsyncpa [#allocation8], 1 }
 0xb88   :  { %1959 = vsyncpa [#allocation8 + $0x1], 1 }
 0xb89   :  { %1960 = vsyncpa [#allocation35], 1 }
 0xb8a   :  { %1962 = vsyncpa [#allocation35 + $0x1], 1 }

</bundles_post_ra>
